<compile_context>
chip_gen: v6e
topology: v6e:2x2x1
jax: 0.10.0
libtpu: 0.0.40
codegen_flags: <defaults>
</compile_context>

<pallas_src>
import jax
import jax.numpy as jnp
from jax.experimental import pallas as pl
from jax.experimental.pallas import tpu as pltpu


# ----------------------------------------------------------------------------------
# helpers (epilogue math kept in f32 -> safe on v5e which has no bf16 VPU/EUP)
# ----------------------------------------------------------------------------------
def _sigmoid(x):
    return 1.0 / (1.0 + jnp.exp(-x))


def _apply_act(y, act):
    if act == "silu":
        return y * _sigmoid(y)
    if act == "sigmoid":
        return _sigmoid(y)
    return y


# ----------------------------------------------------------------------------------
# Kernel 1: fused  act((gate*X) @ W * scale + bias) [+ residual]
# bf16 operands on the MXU, f32 accumulation/epilogue, bf16 output.
# Used for every 1x1 conv (folded BN), the im2col-lowered stem conv.
# The optional `gate` is the SE excitation vector (one row per batch image), applied to
# the activation rows in-kernel so the gated feature map never round-trips HBM.
# ----------------------------------------------------------------------------------
def _make_matmul_kernel(act, has_gate, has_residual):
    def kernel(*refs):
        i = 0
        x_ref = refs[i]; i += 1
        w_ref = refs[i]; i += 1
        s_ref = refs[i]; i += 1
        b_ref = refs[i]; i += 1
        g_ref = None
        r_ref = None
        if has_gate:
            g_ref = refs[i]; i += 1
        if has_residual:
            r_ref = refs[i]; i += 1
        o_ref = refs[i]

        xv = x_ref[...]
        if has_gate:
            # g_ref block is (1, 1, K) -> (1, K); broadcast over the (tm, K) tile
            xv = (xv.astype(jnp.float32) * g_ref[0]).astype(jnp.bfloat16)
        y = jnp.dot(xv, w_ref[...], preferred_element_type=jnp.float32)
        y = y * s_ref[...] + b_ref[...]
        y = _apply_act(y, act)
        if has_residual:
            y = y + r_ref[...].astype(jnp.float32)
        o_ref[...] = y.astype(o_ref.dtype)
    return kernel


def matmul_affine_act(x, w, scale, bias, act=None, residual=None, gate=None,
                      rows_per_batch=None, tile_m=512, out_dtype=jnp.bfloat16):
    M, K = x.shape
    Kw, N = w.shape
    assert K == Kw
    tm = min(tile_m, M)
    if gate is not None:
        assert rows_per_batch is not None and rows_per_batch % 8 == 0
        tm = min(tm, rows_per_batch)          # keep each M-tile inside one batch image
    while M % tm != 0:                        # largest power-of-two-ish divisor of M
        tm //= 2

    in_specs = [
        pl.BlockSpec((tm, K), lambda i: (i, 0)),
        pl.BlockSpec((K, N), lambda i: (0, 0)),   # weight stays resident
        pl.BlockSpec((1, N), lambda i: (0, 0)),
        pl.BlockSpec((1, N), lambda i: (0, 0)),
    ]
    args = [x, w, scale.reshape(1, N), bias.reshape(1, N)]
    if gate is not None:
        hw = rows_per_batch
        in_specs.append(pl.BlockSpec((1, 1, K), lambda i: ((i * tm) // hw, 0, 0)))
        args.append(gate)                     # (n_batch, 1, K) f32
    if residual is not None:
        in_specs.append(pl.BlockSpec((tm, N), lambda i: (i, 0)))
        args.append(residual)

    return pl.pallas_call(
        _make_matmul_kernel(act, gate is not None, residual is not None),
        grid=(M // tm,),
        in_specs=in_specs,
        out_specs=pl.BlockSpec((tm, N), lambda i: (i, 0)),
        out_shape=jax.ShapeDtypeStruct((M, N), out_dtype),
        compiler_params=pltpu.CompilerParams(dimension_semantics=("parallel",)),
    )(*args)


# ----------------------------------------------------------------------------------
# Kernel 2: depthwise KxK conv (+ folded BN + SiLU), stride handled in-kernel with
# strided tap reads; emits the SE spatial-mean vector as a second output so the SE
# path never re-reads the feature map from HBM.
# ----------------------------------------------------------------------------------
def depthwise_conv_bn_silu_pool(x, w, scale, bias, k, stride):
    N, H, W, C = x.shape
    p = (k - 1) // 2
    xp = jnp.pad(x, ((0, 0), (p, p), (p, p), (0, 0)))
    Hp, Wp = H + 2 * p, W + 2 * p
    Ho = (Hp - k) // stride + 1
    Wo = (Wp - k) // stride + 1
    inv_hw = 1.0 / float(Ho * Wo)

    def kernel(x_ref, w_ref, s_ref, b_ref, o_ref, p_ref):
        acc = jnp.zeros((1, Ho, Wo, C), jnp.float32)
        for kh in range(k):
            for kw in range(k):
                tap = w_ref[kh * k + kw].reshape(1, 1, 1, C)        # f32 (C,)
                if stride == 1:
                    xt = x_ref[:, kh:kh + Ho, kw:kw + Wo, :]
                else:
                    xt = x_ref[:, pl.ds(kh, Ho, stride), pl.ds(kw, Wo, stride), :]
                acc = acc + xt.astype(jnp.float32) * tap
        y = acc * s_ref[...].reshape(1, 1, 1, C) + b_ref[...].reshape(1, 1, 1, C)
        y = y * _sigmoid(y)                                          # SiLU, f32
        o_ref[...] = y.astype(o_ref.dtype)
        p_ref[...] = (jnp.sum(y, axis=(1, 2)) * inv_hw).reshape(1, 1, C)

    # TODO(synk): at real 224x224 resolution, tile over spatial row bands / 128-ch chunks
    # (with halo) instead of whole-map blocks so VMEM fits on v7x and both TCs get work.
    out, pooled = pl.pallas_call(
        kernel,
        grid=(N,),
        in_specs=[
            pl.BlockSpec((1, Hp, Wp, C), lambda n: (n, 0, 0, 0)),
            pl.BlockSpec((k * k, C), lambda n: (0, 0)),
            pl.BlockSpec((1, C), lambda n: (0, 0)),
            pl.BlockSpec((1, C), lambda n: (0, 0)),
        ],
        out_specs=[
            pl.BlockSpec((1, Ho, Wo, C), lambda n: (n, 0, 0, 0)),
            pl.BlockSpec((1, 1, C), lambda n: (n, 0, 0)),
        ],
        out_shape=(
            jax.ShapeDtypeStruct((N, Ho, Wo, C), jnp.bfloat16),
            jax.ShapeDtypeStruct((N, 1, C), jnp.float32),
        ),
        compiler_params=pltpu.CompilerParams(dimension_semantics=("parallel",)),
    )(xp, w, scale.reshape(1, C), bias.reshape(1, C))
    return out, pooled


# ----------------------------------------------------------------------------------
# Kernel 3: fused SE MLP  gate = sigmoid(silu(pooled @ W1 + b1) @ W2 + b2)
# Both tiny matmuls in a single pallas_call; intermediate never leaves VMEM.
# ----------------------------------------------------------------------------------
def se_gate(pooled, w1, b1, w2, b2):
    Nb, _, C = pooled.shape
    se_c = w1.shape[1]

    def kernel(p_ref, w1_ref, b1_ref, w2_ref, b2_ref, g_ref):
        pv = p_ref[...].reshape(Nb, C)
        h = jnp.dot(pv.astype(jnp.bfloat16), w1_ref[...],
                    preferred_element_type=jnp.float32) + b1_ref[...]
        h = h * _sigmoid(h)
        g = jnp.dot(h.astype(jnp.bfloat16), w2_ref[...],
                    preferred_element_type=jnp.float32) + b2_ref[...]
        g_ref[...] = _sigmoid(g).reshape(Nb, 1, C)

    return pl.pallas_call(
        kernel,
        in_specs=[pl.BlockSpec(memory_space=pltpu.MemorySpace.VMEM)] * 5,
        out_specs=pl.BlockSpec(memory_space=pltpu.MemorySpace.VMEM),
        out_shape=jax.ShapeDtypeStruct((Nb, 1, C), jnp.float32),
    )(pooled, w1, b1.reshape(1, se_c), w2, b2.reshape(1, C))


# ----------------------------------------------------------------------------------
# Kernel 4: fused head  (GlobalAvgPool2d -> Linear(1280,12) -> log_softmax), f32
# ----------------------------------------------------------------------------------
def head_pool_fc_logsoftmax(x, w, b):
    N, H, W, C = x.shape
    D = w.shape[1]
    xr = x.reshape(N, H * W, C)

    def kernel(x_ref, w_ref, b_ref, o_ref):
        pooled = jnp.mean(x_ref[...].astype(jnp.float32), axis=1)   # (N, C)
        logits = jnp.dot(pooled, w_ref[...], preferred_element_type=jnp.float32) + b_ref[...]
        m = jnp.max(logits, axis=-1, keepdims=True)
        z = logits - m
        lse = jnp.log(jnp.sum(jnp.exp(z), axis=-1, keepdims=True))
        o_ref[...] = z - lse                                         # log_softmax(dim=-1)

    return pl.pallas_call(
        kernel,
        in_specs=[pl.BlockSpec(memory_space=pltpu.MemorySpace.VMEM)] * 3,
        out_specs=pl.BlockSpec(memory_space=pltpu.MemorySpace.VMEM),
        out_shape=jax.ShapeDtypeStruct((N, D), jnp.float32),
    )(xr, w, b.reshape(1, D))


# ----------------------------------------------------------------------------------
# EfficientNet-B0 structure (timm children()[:-2]: conv_stem .. bn2/act2)
# ----------------------------------------------------------------------------------
B0_STAGES = [  # (expand, kernel, stride, out_channels, repeats)
    (1, 3, 1, 16, 1),
    (6, 3, 2, 24, 2),
    (6, 5, 2, 40, 2),
    (6, 3, 2, 80, 3),
    (6, 5, 1, 112, 3),
    (6, 5, 2, 192, 4),
    (6, 3, 1, 320, 1),
]
STEM_CH = 32
HEAD_CH = 1280
NUM_CLASSES = 12


class _KeyGen:
    def __init__(self, seed):
        self._key = jax.random.PRNGKey(seed)
        self._n = 0

    def __call__(self):
        self._n += 1
        return jax.random.fold_in(self._key, self._n)


def _normal(kg, shape, scale, dtype=jnp.float32):
    return (scale * jax.random.normal(kg(), shape)).astype(dtype)


def _folded_bn(kg, c):
    # eval-mode BatchNorm folded into per-channel affine (f32)
    return 1.0 + _normal(kg, (c,), 0.05), _normal(kg, (c,), 0.05)


def init_params(seed=0):
    kg = _KeyGen(seed)
    bf16 = jnp.bfloat16
    p = {}
    p["stem_w"] = _normal(kg, (3, 3, 3, STEM_CH), (3 * 3 * 3) ** -0.5, bf16)  # HWIO
    p["stem_s"], p["stem_b"] = _folded_bn(kg, STEM_CH)
    blocks = []
    cin = STEM_CH
    for (expand, k, stride, cout, repeats) in B0_STAGES:
        for r in range(repeats):
            s = stride if r == 0 else 1
            cmid = cin * expand
            se_c = max(1, int(round(cin * 0.25)))
            bp = {"k": k, "stride": s, "expand": expand, "use_res": (s == 1 and cin == cout)}
            if expand != 1:
                bp["exp_w"] = _normal(kg, (cin, cmid), cin ** -0.5, bf16)
                bp["exp_s"], bp["exp_b"] = _folded_bn(kg, cmid)
            bp["dw_w"] = _normal(kg, (k * k, cmid), 1.0 / k)          # f32 (VPU path)
            bp["dw_s"], bp["dw_b"] = _folded_bn(kg, cmid)
            bp["se_rw"] = _normal(kg, (cmid, se_c), cmid ** -0.5, bf16)
            bp["se_rb"] = _normal(kg, (se_c,), 0.05)
            bp["se_ew"] = _normal(kg, (se_c, cmid), se_c ** -0.5, bf16)
            bp["se_eb"] = _normal(kg, (cmid,), 0.05)
            bp["pw_w"] = _normal(kg, (cmid, cout), cmid ** -0.5, bf16)
            bp["pw_s"], bp["pw_b"] = _folded_bn(kg, cout)
            blocks.append(bp)
            cin = cout
    p["blocks"] = blocks
    p["head_w"] = _normal(kg, (cin, HEAD_CH), cin ** -0.5, bf16)
    p["head_s"], p["head_b"] = _folded_bn(kg, HEAD_CH)
    p["fc_w"] = _normal(kg, (HEAD_CH, NUM_CLASSES), HEAD_CH ** -0.5)   # f32 head
    p["fc_b"] = _normal(kg, (NUM_CLASSES,), 0.05)
    return p


def conv1x1(x, w, scale, bias, act=None, residual=None, gate=None):
    N, H, W, Cin = x.shape
    Cout = w.shape[1]
    hw = H * W
    if gate is not None and hw % 8 != 0:
        # tiny deep-stage maps (2x2): gate in glue (negligible), keep the matmul fused otherwise
        x = (x.astype(jnp.float32) * gate.reshape(N, 1, 1, Cin)).astype(jnp.bfloat16)
        gate = None
    r = None if residual is None else residual.reshape(N * hw, Cout)
    y = matmul_affine_act(x.reshape(N * hw, Cin), w, scale, bias, act=act,
                          residual=r, gate=gate, rows_per_batch=hw)
    return y.reshape(N, H, W, Cout)


def conv_stem(x, w, scale, bias):
    # 3x3/stride-2 conv lowered to bf16 im2col (glue) + Pallas fused matmul (hot path).
    # TODO(synk): at larger resolutions, accumulate taps in-kernel instead of materializing patches.
    k, stride, p = 3, 2, 1
    N, H, W, C = x.shape
    xp = jnp.pad(x, ((0, 0), (p, p), (p, p), (0, 0)))
    Ho = (H + 2 * p - k) // stride + 1
    Wo = (W + 2 * p - k) // stride + 1
    taps = []
    for kh in range(k):
        for kw in range(k):
            taps.append(xp[:, kh:kh + (Ho - 1) * stride + 1:stride,
                           kw:kw + (Wo - 1) * stride + 1:stride, :])
    patches = jnp.concatenate(taps, axis=-1)  # (N, Ho, Wo, k*k*C), (kh,kw,c) order
    Cout = w.shape[-1]
    y = matmul_affine_act(patches.reshape(N * Ho * Wo, k * k * C),
                          w.reshape(k * k * C, Cout), scale, bias, act="silu")
    return y.reshape(N, Ho, Wo, Cout)


def mbconv_block(x, bp):
    h = x
    if bp["expand"] != 1:
        h = conv1x1(h, bp["exp_w"], bp["exp_s"], bp["exp_b"], act="silu")
    # depthwise conv (strided in-kernel) also emits the SE pooled vector
    h, pooled = depthwise_conv_bn_silu_pool(h, bp["dw_w"], bp["dw_s"], bp["dw_b"],
                                            bp["k"], bp["stride"])
    gate = se_gate(pooled, bp["se_rw"], bp["se_rb"], bp["se_ew"], bp["se_eb"])
    # projection 1x1 conv + folded BN; SE gating and residual fused into the matmul
    res = x if bp["use_res"] else None
    return conv1x1(h, bp["pw_w"], bp["pw_s"], bp["pw_b"], act=None,
                   residual=res, gate=gate)


def effnet_forward(params, im_nchw):
    x = jnp.transpose(im_nchw, (0, 2, 3, 1)).astype(jnp.bfloat16)   # NCHW -> NHWC, bf16
    x = conv_stem(x, params["stem_w"], params["stem_s"], params["stem_b"])
    for bp in params["blocks"]:
        x = mbconv_block(x, bp)
    x = conv1x1(x, params["head_w"], params["head_s"], params["head_b"], act="silu")  # conv_head+bn2+act2
    return head_pool_fc_logsoftmax(x, params["fc_w"], params["fc_b"])


if __name__ == "__main__":
    params = init_params(seed=0)
    im = jax.random.normal(jax.random.PRNGKey(0), (2, 3, 64, 64), jnp.float32)
    y = effnet_forward(params, im)
    y = jax.block_until_ready(y)
    assert y.shape == (2, NUM_CLASSES)
    assert bool(jnp.all(jnp.isfinite(y)))
    # rows of a log_softmax must exp-sum to 1
    assert bool(jnp.allclose(jnp.sum(jnp.exp(y), axis=-1), 1.0, atol=1e-3))
    print("KERNEL_OK")
</pallas_src>

<mosaic_0001>
module attributes {stable_mosaic.version = 11 : i64} {
  func.func @kernel(%arg0: i32, %arg1: memref<512x27xbf16, #tpu.memory_space<vmem>>, %arg2: memref<27x32xbf16, #tpu.memory_space<vmem>>, %arg3: memref<1x32xf32, #tpu.memory_space<vmem>>, %arg4: memref<1x32xf32, #tpu.memory_space<vmem>>, %arg5: memref<512x32xbf16, #tpu.memory_space<vmem>>) attributes {dimension_semantics = [#tpu.dimension_semantics<parallel>], iteration_bounds = array<i64: 4>, scalar_prefetch = 0 : i64, scratch_operands = 0 : i64, tpu.core_type = #tpu.core_type<tc>, window_params = [{transform_indices = @transform_0, window_bounds = array<i64: 512, 27>}, {pipeline_mode = #tpu.pipeline_mode<synchronous>, transform_indices = @transform_1, window_bounds = array<i64: 27, 32>}, {pipeline_mode = #tpu.pipeline_mode<synchronous>, transform_indices = @transform_2, window_bounds = array<i64: 1, 32>}, {pipeline_mode = #tpu.pipeline_mode<synchronous>, transform_indices = @transform_3, window_bounds = array<i64: 1, 32>}, {transform_indices = @transform_4, window_bounds = array<i64: 512, 32>}]} {
    %c0 = arith.constant 0 : index
    %c0_0 = arith.constant 0 : index
    %0 = vector.load %arg1[%c0, %c0_0] : memref<512x27xbf16, #tpu.memory_space<vmem>>, vector<512x27xbf16>
    %c0_1 = arith.constant 0 : index
    %c0_2 = arith.constant 0 : index
    %1 = vector.load %arg2[%c0_1, %c0_2] : memref<27x32xbf16, #tpu.memory_space<vmem>>, vector<27x32xbf16>
    %cst = arith.constant dense<0.000000e+00> : vector<512x32xf32>
    %2 = tpu.matmul %0, %1, %cst {dimension_numbers = #tpu.dot_dimension_numbers<[1], [0], [0], [1], [0, 0, 1, 1], [], []>} : vector<512x27xbf16>, vector<27x32xbf16>, vector<512x32xf32> -> vector<512x32xf32>
    %c0_3 = arith.constant 0 : index
    %c0_4 = arith.constant 0 : index
    %3 = vector.load %arg3[%c0_3, %c0_4] : memref<1x32xf32, #tpu.memory_space<vmem>>, vector<1x32xf32>
    %4 = vector.broadcast %3 : vector<1x32xf32> to vector<512x32xf32>
    %5 = arith.mulf %2, %4 : vector<512x32xf32>
    %c0_5 = arith.constant 0 : index
    %c0_6 = arith.constant 0 : index
    %6 = vector.load %arg4[%c0_5, %c0_6] : memref<1x32xf32, #tpu.memory_space<vmem>>, vector<1x32xf32>
    %7 = vector.broadcast %6 : vector<1x32xf32> to vector<512x32xf32>
    %8 = arith.addf %5, %7 : vector<512x32xf32>
    %cst_7 = arith.constant 0.000000e+00 : f32
    %9 = vector.broadcast %cst_7 : f32 to vector<512x32xf32>
    %10 = arith.subf %9, %8 : vector<512x32xf32>
    %11 = math.exp %10 : vector<512x32xf32>
    %cst_8 = arith.constant 1.000000e+00 : f32
    %12 = vector.broadcast %cst_8 : f32 to vector<512x32xf32>
    %13 = arith.addf %12, %11 : vector<512x32xf32>
    %cst_9 = arith.constant 1.000000e+00 : f32
    %14 = vector.broadcast %cst_9 : f32 to vector<512x32xf32>
    %15 = arith.divf %14, %13 : vector<512x32xf32>
    %16 = arith.mulf %8, %15 : vector<512x32xf32>
    %17 = arith.truncf %16 : vector<512x32xf32> to vector<512x32xbf16>
    %c0_10 = arith.constant 0 : index
    %c0_11 = arith.constant 0 : index
    %18 = vector.load %arg5[%c0_10, %c0_11] : memref<512x32xbf16, #tpu.memory_space<vmem>>, vector<512x32xbf16>
    tpu.vector_store %arg5[%c0_10, %c0_11], %17 {strides = array<i32>} : memref<512x32xbf16, #tpu.memory_space<vmem>>, vector<512x32xbf16>,
    return
  }
  func.func @transform_0(%arg0: i32) -> (i32, i32) {
    %c0_i32 = arith.constant 0 : i32
    %c0_i32_0 = arith.constant 0 : i32
    return %arg0, %c0_i32 : i32, i32
  }
  func.func @transform_1(%arg0: i32) -> (i32, i32) {
    %c0_i32 = arith.constant 0 : i32
    %c0_i32_0 = arith.constant 0 : i32
    %c0_i32_1 = arith.constant 0 : i32
    return %c0_i32, %c0_i32_0 : i32, i32
  }
  func.func @transform_2(%arg0: i32) -> (i32, i32) {
    %c0_i32 = arith.constant 0 : i32
    %c0_i32_0 = arith.constant 0 : i32
    %c0_i32_1 = arith.constant 0 : i32
    return %c0_i32, %c0_i32_0 : i32, i32
  }
  func.func @transform_3(%arg0: i32) -> (i32, i32) {
    %c0_i32 = arith.constant 0 : i32
    %c0_i32_0 = arith.constant 0 : i32
    %c0_i32_1 = arith.constant 0 : i32
    return %c0_i32, %c0_i32_0 : i32, i32
  }
  func.func @transform_4(%arg0: i32) -> (i32, i32) {
    %c0_i32 = arith.constant 0 : i32
    %c0_i32_0 = arith.constant 0 : i32
    return %arg0, %c0_i32 : i32, i32
  }
}

</mosaic_0001>

<bundles_post_ra>
// kernel: tpu_custom_call.1
= control target key start
LH: loop header
LB: loop body
LE: loop exit
PB: predicated region body
PF: predicated region fallthrough
CT: control target
= control target key end

     0   :  { %s2449_s15 = smov 0   ;;  %s3103_s0 = inlined_call_operand.vmem [shape: bf16[2048,27], index: 0, kind: input, shape index: {}]   ;;  %s3104_s1 = inlined_call_operand.vmem [shape: bf16[27,32], index: 1, kind: input, shape index: {}]   ;;  %s3105_s2 = inlined_call_operand.vmem [shape: f32[1,32], index: 2, kind: input, shape index: {}]   ;;  %s3106_s3 = inlined_call_operand.vmem [shape: f32[1,32], index: 3, kind: input, shape index: {}]   ;;  %s3107_s4 = inlined_call_operand.vmem [shape: bf16[2048,32], index: 4, kind: output, shape index: {}]  }
   0x1 LB: > { %s1801_s16 = sadd.s32 4294967295, %s2421_s15   ;;  %p1805_p0 = scmp.ge.s32.totalorder %s2421_s15, 1  ;;  %s2421_s15 = sphi %s2449_s15, %s14_s15  }
   0x2   : > { %p163_p1 = scmp.lt.s32.totalorder %s2421_s15, 5 }
   0x4   : > { %p164_p2 = pnand %p1805_p0, %p163_p1 }
   0x5   : > { %s1806_s19 = sshll.u32 (!%p164_p2), %s1801_s16, 6 }
   0x6   : > { %167 = sbr.rel (%p164_p2) target bundleno = 388 (0x184), region = 36  ;;  %p190_p3 = scmp.lt.s32.totalorder (!%p164_p2), %s1806_s19, 255 }
   0xb   : > { %v2123_v0 = vld [vmem:[%s3104_s1 + $0x8] sm:$0x3f]   ;;  %vm538_vm0 = vcmask 1044480   ;;  %vm539_vm1 = vcmask 1045504   ;;  %v2423_v1 = vmov 65535   ;;  %v2124_v5 = vld [vmem:[%s3104_s1] sm:$0xff]  }
   0xc   : > { %v540_v2 = vsel %vm538_vm0, 4294967295, %v2423_v1  ;;  %s3109_s19 = smov (!%p190_p3, %s1806_s19), 255  ;;  %vm441_vm2 = vcmask 220160   ;;  %v2540_v38 = vld [vmem:[%s3105_s2] ss:$0 sm:$0xff]  ;;  %vm1680_vm3 = vcmask 257024  }
   0xd   : > { %v541_v3 = vsel %vm539_vm1, %v540_v2, 0  ;;  %s1807_s22 = sshll.u32 %s3109_s19, 2  ;;  %v2545_v40 = vld [vmem:[%s3106_s3] ss:$0 sm:$0xff] }
   0xe   : > { %v543_v4 = vand.u32 %v2123_v0, %v541_v3  ;;  %s2471_s25 = scalar_lea.vmem %s3103_s0, %s1807_s22  ;;  %s2701_s6 = scalar_lea.vmem %s3107_s4, %s1807_s22 }
   0xf   : > { %v2125_v6 = vld [vmem:[%s2471_s25] sm:$0xff]   ;;  %v2127_v8 = vld [vmem:[%s2471_s25 + $0x8] sm:$0xff]   ;;  %v2129_v10 = vld [vmem:[%s2471_s25 + $0x10] sm:$0xff]  }
  0x10   : > { %2042 = vmatprep.subr.bf16.mxu0 %v543_v4  ;;  %2110 = vmatprep.subr.bf16.mxu1 %v543_v4  ;;  %v2126_v7 = vld [vmem:[%s2471_s25 + $0x80] sm:$0xff]   ;;  %v2128_v9 = vld [vmem:[%s2471_s25 + $0x88] sm:$0xff]   ;;  %v2130_v11 = vld [vmem:[%s2471_s25 + $0x90] sm:$0xff]  }
  0x11   : > { %2043 = vmatpush3.bf16.msra.mxu0 %v543_v4  ;;  %2112 = vmatpush3.bf16.msra.mxu1 %v543_v4  ;;  %v2131_v12 = vld [vmem:[%s2471_s25 + $0x18] sm:$0xff]   ;;  %v2133_v14 = vld [vmem:[%s2471_s25 + $0x20] sm:$0xff]   ;;  %v2135_v16 = vld [vmem:[%s2471_s25 + $0x28] sm:$0xff]  }
  0x12   : > { %2044 = vmatprep.subr.bf16.mxu0 %v2124_v5  ;;  %2111 = vmatprep.subr.bf16.mxu1 %v2124_v5  ;;  %v2132_v13 = vld [vmem:[%s2471_s25 + $0x98] sm:$0xff]   ;;  %v2134_v15 = vld [vmem:[%s2471_s25 + $0xa0] sm:$0xff]   ;;  %v2136_v17 = vld [vmem:[%s2471_s25 + $0xa8] sm:$0xff]  }
  0x13   : > { %2046 = vmatprep.mubr.msk.bf16.mxu0 %vm441_vm2, %v2125_v6  ;;  %2078 = vmatprep.mubr.msk.bf16.mxu1 %vm441_vm2, %v2126_v7  ;;  %v2137_v18 = vld [vmem:[%s2471_s25 + $0x30] sm:$0xff]   ;;  %v2139_v20 = vld [vmem:[%s2471_s25 + $0x38] sm:$0xff]   ;;  %v2141_v22 = vld [vmem:[%s2471_s25 + $0x40] sm:$0xff]  }
  0x14   : > { %v2138_v19 = vld [vmem:[%s2471_s25 + $0xb0] sm:$0xff]   ;;  %v2140_v21 = vld [vmem:[%s2471_s25 + $0xb8] sm:$0xff]   ;;  %v2142_v23 = vld [vmem:[%s2471_s25 + $0xc0] sm:$0xff]  }
  0x15   : > { %2045 = vmatpush3.bf16.msra.mxu0 %v2124_v5  ;;  %2113 = vmatpush3.bf16.msra.mxu1 %v2124_v5  ;;  %v2143_v24 = vld [vmem:[%s2471_s25 + $0x48] sm:$0xff]   ;;  %v2145_v26 = vld [vmem:[%s2471_s25 + $0x50] sm:$0xff]   ;;  %v2147_v28 = vld [vmem:[%s2471_s25 + $0x58] sm:$0xff]  }
  0x16   : > { %v2144_v25 = vld [vmem:[%s2471_s25 + $0xc8] sm:$0xff]   ;;  %v2146_v27 = vld [vmem:[%s2471_s25 + $0xd0] sm:$0xff]   ;;  %v2148_v29 = vld [vmem:[%s2471_s25 + $0xd8] sm:$0xff]  }
  0x17   : > { %v2149_v30 = vld [vmem:[%s2471_s25 + $0x60] sm:$0xff]   ;;  %v2151_v32 = vld [vmem:[%s2471_s25 + $0x68] sm:$0xff]   ;;  %v2153_v34 = vld [vmem:[%s2471_s25 + $0x70] sm:$0xff]  }
  0x18   : > { %2047 = vmatmul.mubr.msk.bf16.vlgmr.msra.gmra.mxu0 %vm441_vm2, %v2127_v8  ;;  %2079 = vmatmul.mubr.msk.bf16.vlgmr.msra.gmra.mxu1 %vm441_vm2, %v2128_v9  ;;  %v2150_v31 = vld [vmem:[%s2471_s25 + $0xe0] sm:$0xff]   ;;  %v2152_v33 = vld [vmem:[%s2471_s25 + $0xe8] sm:$0xff]   ;;  %v2154_v35 = vld [vmem:[%s2471_s25 + $0xf0] sm:$0xff]  }
  0x19   : > { %2050 = vmatprep.mubr.msk.bf16.mxu0 %vm441_vm2, %v2129_v10  ;;  %2082 = vmatprep.mubr.msk.bf16.mxu1 %vm441_vm2, %v2130_v11  ;;  %v2155_v36 = vld [vmem:[%s2471_s25 + $0x78] sm:$0xff]  }
  0x1a   : > { %v2156_v37 = vld [vmem:[%s2471_s25 + $0xf8] sm:$0xff]  }
  0x20   : > { %2051 = vmatmul.mubr.msk.bf16.gmra.mxu0 %vm441_vm2, %v2131_v12  ;;  %2083 = vmatmul.mubr.msk.bf16.gmra.mxu1 %vm441_vm2, %v2132_v13 }
  0x21   : > { %2054 = vmatprep.mubr.msk.bf16.mxu0 %vm441_vm2, %v2133_v14  ;;  %2086 = vmatprep.mubr.msk.bf16.mxu1 %vm441_vm2, %v2134_v15 }
  0x28   : > { %2055 = vmatmul.mubr.msk.bf16.gmra.mxu0 %vm441_vm2, %v2135_v16  ;;  %2087 = vmatmul.mubr.msk.bf16.gmra.mxu1 %vm441_vm2, %v2136_v17 }
  0x29   : > { %2058 = vmatprep.mubr.msk.bf16.mxu0 %vm441_vm2, %v2137_v18  ;;  %2090 = vmatprep.mubr.msk.bf16.mxu1 %vm441_vm2, %v2138_v19 }
  0x30   : > { %2059 = vmatmul.mubr.msk.bf16.gmra.mxu0 %vm441_vm2, %v2139_v20  ;;  %2091 = vmatmul.mubr.msk.bf16.gmra.mxu1 %vm441_vm2, %v2140_v21 }
  0x31   : > { %2062 = vmatprep.mubr.msk.bf16.mxu0 %vm441_vm2, %v2141_v22  ;;  %2094 = vmatprep.mubr.msk.bf16.mxu1 %vm441_vm2, %v2142_v23 }
  0x38   : > { %2063 = vmatmul.mubr.msk.bf16.gmra.mxu0 %vm441_vm2, %v2143_v24  ;;  %2095 = vmatmul.mubr.msk.bf16.gmra.mxu1 %vm441_vm2, %v2144_v25 }
  0x39   : > { %2066 = vmatprep.mubr.msk.bf16.mxu0 %vm441_vm2, %v2145_v26  ;;  %2098 = vmatprep.mubr.msk.bf16.mxu1 %vm441_vm2, %v2146_v27 }
  0x40   : > { %2067 = vmatmul.mubr.msk.bf16.gmra.mxu0 %vm441_vm2, %v2147_v28  ;;  %2099 = vmatmul.mubr.msk.bf16.gmra.mxu1 %vm441_vm2, %v2148_v29 }
  0x41   : > { %2070 = vmatprep.mubr.msk.bf16.mxu0 %vm441_vm2, %v2149_v30  ;;  %2102 = vmatprep.mubr.msk.bf16.mxu1 %vm441_vm2, %v2150_v31 }
  0x48   : > { %2071 = vmatmul.mubr.msk.bf16.gmra.mxu0 %vm441_vm2, %v2151_v32  ;;  %2103 = vmatmul.mubr.msk.bf16.gmra.mxu1 %vm441_vm2, %v2152_v33 }
  0x49   : > { %2074 = vmatprep.mubr.msk.bf16.mxu0 %vm441_vm2, %v2153_v34  ;;  %2106 = vmatprep.mubr.msk.bf16.mxu1 %vm441_vm2, %v2154_v35 }
  0x50   : > { %2075 = vmatmul.mubr.msk.bf16.gmra.mxu0 %vm441_vm2, %v2155_v36  ;;  %2107 = vmatmul.mubr.msk.bf16.gmra.mxu1 %vm441_vm2, %v2156_v37 }
  0xd8   : > { %v2048_v39 = vpop.f32.mrf.mxu0  ;;  %v2080_v41 = vpop.f32.mrf.mxu1 }
  0xd9   : > { %v843_v42 = vmul.f32 %v2048_v39, %v2540_v38  ;;  %v875_v43 = vmul.f32 %v2080_v41, %v2540_v38 }
  0xda   : > { %v579_v44 = vpop.f32.mrf.mxu0  ;;  %v707_v45 = vpop.f32.mrf.mxu1 }
  0xdb   : > { %v2550_v46 = vadd.f32 %v2545_v40, %v843_v42  ;;  %v2553_v47 = vadd.f32 %v2545_v40, %v875_v43  ;;  %v841_v48 = vmul.f32 %v2540_v38, %v579_v44  ;;  %v873_v49 = vmul.f32 %v2540_v38, %v707_v45 }
  0xdc   : > { %v2049_v50 = vpop.f32.mrf.mxu0  ;;  %v2081_v51 = vpop.f32.mrf.mxu1 }
  0xdd   : > { %v978_v52 = vsub.f32 0.0, %v2550_v46  ;;  %v1010_v53 = vsub.f32 0.0, %v2553_v47  ;;  %v2560_v54 = vadd.f32 %v2545_v40, %v841_v48  ;;  %v2563_v55 = vadd.f32 %v2545_v40, %v873_v49 }
  0xde   : > { %v844_v56 = vmul.f32 %v2049_v50, %v2540_v38  ;;  %v876_v57 = vmul.f32 %v2081_v51, %v2540_v38  ;;  %v582_v58 = vpop.f32.mrf.mxu0  ;;  %v710_v59 = vpop.f32.mrf.mxu1 }
  0xdf   : > { %v1044_v60 = vmul.f32 1.442695, %v978_v52  ;;  %v1108_v61 = vmul.f32 1.442695, %v1010_v53  ;;  %v976_v62 = vsub.f32 0.0, %v2560_v54  ;;  %v1008_v63 = vsub.f32 0.0, %v2563_v55 }
  0xe0   : > { %v2570_v0 = vadd.f32 %v2545_v40, %v844_v56  ;;  %v2573_v1 = vadd.f32 %v2545_v40, %v876_v57  ;;  %v842_v2 = vmul.f32 %v2540_v38, %v582_v58  ;;  %v874_v3 = vmul.f32 %v2540_v38, %v710_v59  ;;  %v2052_v4 = vpop.f32.mrf.mxu0  ;;  %v2084_v5 = vpop.f32.mrf.mxu1 }
  0xe1   : > { %2157 = vpow2.f32 %v1044_v60  ;;  %v1040_v6 = vmul.f32 1.442695, %v976_v62  ;;  %v1104_v7 = vmul.f32 1.442695, %v1008_v63  ;;  %v847_v8 = vmul.f32 %v2052_v4, %v2540_v38 }
  0xe2   : > { %2159 = vpow2.f32 %v1108_v61  ;;  %v979_v9 = vsub.f32 0.0, %v2570_v0  ;;  %v1011_v10 = vsub.f32 0.0, %v2573_v1  ;;  %v2581_v11 = vadd.f32 %v2545_v40, %v842_v2  ;;  %v595_v12 = vpop.f32.mrf.mxu0  ;;  %v723_v13 = vpop.f32.mrf.mxu1 }
  0xe3   : > { %2161 = vpow2.f32 %v1040_v6  ;;  %v2584_v14 = vadd.f32 %v2545_v40, %v874_v3  ;;  %v2587_v15 = vadd.f32 %v2545_v40, %v847_v8  ;;  %v879_v16 = vmul.f32 %v2084_v5, %v2540_v38 }
  0xe4   : > { %2163 = vpow2.f32 %v1104_v7  ;;  %v1046_v17 = vmul.f32 1.442695, %v979_v9  ;;  %v1110_v18 = vmul.f32 1.442695, %v1011_v10  ;;  %v977_v19 = vsub.f32 0.0, %v2581_v11  ;;  %v2053_v20 = vpop.f32.mrf.mxu0  ;;  %v2085_v21 = vpop.f32.mrf.mxu1 }
  0xe5   : > { %v1009_v22 = vsub.f32 0.0, %v2584_v14  ;;  %v982_v23 = vsub.f32 0.0, %v2587_v15  ;;  %v2594_v24 = vadd.f32 %v2545_v40, %v879_v16  ;;  %v845_v25 = vmul.f32 %v2540_v38, %v595_v12 }
  0xe6   : > { %2165 = vpow2.f32 %v1046_v17  ;;  %v1042_v26 = vmul.f32 1.442695, %v977_v19  ;;  %v877_v27 = vmul.f32 %v2540_v38, %v723_v13  ;;  %v848_v28 = vmul.f32 %v2053_v20, %v2540_v38  ;;  %v598_v29 = vpop.f32.mrf.mxu0  ;;  %v726_v30 = vpop.f32.mrf.mxu1 }
  0xe7   : > { %2167 = vpow2.f32 %v1110_v18  ;;  %v1106_v31 = vmul.f32 1.442695, %v1009_v22  ;;  %v1052_v32 = vmul.f32 1.442695, %v982_v23  ;;  %v1014_v33 = vsub.f32 0.0, %v2594_v24 }
  0xe8   : > { %2169 = vpow2.f32 %v1042_v26  ;;  %v2601_v34 = vadd.f32 %v2545_v40, %v845_v25  ;;  %v2604_v35 = vadd.f32 %v2545_v40, %v877_v27  ;;  %v2607_v36 = vadd.f32 %v2545_v40, %v848_v28  ;;  %v2056_v37 = vpop.f32.mrf.mxu0  ;;  %v2088_v39 = vpop.f32.mrf.mxu1 }
  0xe9   : > { %2171 = vpow2.f32 %v1106_v31  ;;  %v1116_v41 = vmul.f32 1.442695, %v1014_v33  ;;  %v880_v42 = vmul.f32 %v2085_v21, %v2540_v38  ;;  %v846_v43 = vmul.f32 %v2540_v38, %v598_v29 }
  0xea   : > { %2173 = vpow2.f32 %v1052_v32  ;;  %v980_v44 = vsub.f32 0.0, %v2601_v34  ;;  %v1012_v45 = vsub.f32 0.0, %v2604_v35  ;;  %v983_v48 = vsub.f32 0.0, %v2607_v36  ;;  %v611_v52 = vpop.f32.mrf.mxu0  ;;  %v739_v53 = vpop.f32.mrf.mxu1 }
  0xeb   : > { %2175 = vpow2.f32 %v1116_v41  ;;  %v2615_v49 = vadd.f32 %v2545_v40, %v880_v42  ;;  %v2618_v50 = vadd.f32 %v2545_v40, %v846_v43  ;;  %v878_v51 = vmul.f32 %v2540_v38, %v726_v30 }
  0xec   : > { %v1048_v56 = vmul.f32 1.442695, %v980_v44  ;;  %v1112_v57 = vmul.f32 1.442695, %v1012_v45  ;;  %v1054_v58 = vmul.f32 1.442695, %v983_v48  ;;  %v851_v59 = vmul.f32 %v2056_v37, %v2540_v38  ;;  %v2057_v10 = vpop.f32.mrf.mxu0  ;;  %v2089_v18 = vpop.f32.mrf.mxu1 }
  0xed   : > { %v1015_v60 = vsub.f32 0.0, %v2615_v49  ;;  %v981_v61 = vsub.f32 0.0, %v2618_v50  ;;  %v2625_v62 = vadd.f32 %v2545_v40, %v878_v51  ;;  %v883_v63 = vmul.f32 %v2088_v39, %v2540_v38 }
  0xee   : > { %v2158_v2 = vpop.eup %2157  ;;  %2177 = vpow2.f32 %v1048_v56  ;;  %v2629_v3 = vadd.f32 %v2545_v40, %v851_v59  ;;  %v849_v4 = vmul.f32 %v2540_v38, %v611_v52  ;;  %v881_v5 = vmul.f32 %v2540_v38, %v739_v53  ;;  %v614_v31 = vpop.f32.mrf.mxu0 }
  0xef   : > { %v2160_v6 = vpop.eup %2159  ;;  %v1170_v7 = vadd.f32 1.0, %v2158_v2  ;;  %2179 = vpow2.f32 %v1112_v57  ;;  %v1118_v8 = vmul.f32 1.442695, %v1015_v60  ;;  %v2633_v9 = vmul.f32 1.442695, %v981_v61  ;;  %v742_v41 = vpop.f32.mrf.mxu1 }
  0xf0   : > { %v2162_v12 = vpop.eup %2161  ;;  %v1202_v13 = vadd.f32 1.0, %v2160_v6  ;;  %2181 = vpow2.f32 %v1054_v58  ;;  %v1013_v16 = vsub.f32 0.0, %v2625_v62  ;;  %v986_v17 = vsub.f32 0.0, %v2629_v3  ;;  %v2060_v60 = vpop.f32.mrf.mxu0 }
  0xf1   : > { %v2164_v19 = vpop.eup %2163  ;;  %2183 = vrcp.f32 %v1170_v7  ;;  %v1168_v20 = vadd.f32 1.0, %v2162_v12  ;;  %v2638_v21 = vadd.f32 %v2545_v40, %v883_v63  ;;  %v2641_v22 = vadd.f32 %v2545_v40, %v849_v4 }
  0xf2   : > { %2185 = vrcp.f32 %v1202_v13  ;;  %v1200_v23 = vadd.f32 1.0, %v2164_v19  ;;  %v1114_v25 = vmul.f32 1.442695, %v1013_v16  ;;  %v2643_v26 = vmul.f32 1.442695, %v986_v17 }
  0xf3   : > { %v2166_v27 = vpop.eup %2165  ;;  %2187 = vrcp.f32 %v1168_v20  ;;  %v1018_v28 = vsub.f32 0.0, %v2638_v21  ;;  %v984_v29 = vsub.f32 0.0, %v2641_v22  ;;  %v2648_v30 = vadd.f32 %v2545_v40, %v881_v5  ;;  %v2092_v5 = vpop.f32.mrf.mxu1 }
  0xf4   : > { %v2168_v32 = vpop.eup %2167  ;;  %2189 = vrcp.f32 %v1200_v23  ;;  %v1171_v33 = vadd.f32 1.0, %v2166_v27  ;;  %v852_v37 = vmul.f32 %v2057_v10, %v2540_v38  ;;  %v884_v39 = vmul.f32 %v2089_v18, %v2540_v38 }
  0xf5   : > { %v2170_v42 = vpop.eup %2169  ;;  %v1203_v43 = vadd.f32 1.0, %v2168_v32  ;;  %2191 = vpow2.f32 %v1118_v8  ;;  %v2652_v44 = vmul.f32 1.442695, %v1018_v28  ;;  %v2654_v45 = vmul.f32 1.442695, %v984_v29  ;;  %v627_v29 = vpop.f32.mrf.mxu0 }
  0xf6   : > { %v2172_v48 = vpop.eup %2171  ;;  %2193 = vrcp.f32 %v1171_v33  ;;  %v1169_v51 = vadd.f32 1.0, %v2170_v42  ;;  %v1016_v52 = vsub.f32 0.0, %v2648_v30  ;;  %v2658_v53 = vadd.f32 %v2545_v40, %v852_v37 }
  0xf7   : > { %v2174_v56 = vpop.eup %2173  ;;  %2195 = vrcp.f32 %v1203_v43  ;;  %v1201_v57 = vadd.f32 1.0, %v2172_v48  ;;  %v2661_v58 = vadd.f32 %v2545_v40, %v884_v39  ;;  %v850_v59 = vmul.f32 %v2540_v38, %v614_v31 }
  0xf8   : > { %v2176_v61 = vpop.eup %2175  ;;  %2197 = vrcp.f32 %v1169_v51  ;;  %v1174_v63 = vadd.f32 1.0, %v2174_v56  ;;  %v2664_v2 = vmul.f32 1.442695, %v1016_v52  ;;  %v987_v4 = vsub.f32 0.0, %v2658_v53 }
  0xf9   : > { %2199 = vrcp.f32 %v1201_v57  ;;  %v1206_v6 = vadd.f32 1.0, %v2176_v61  ;;  %v1019_v7 = vsub.f32 0.0, %v2661_v58  ;;  %v2669_v8 = vadd.f32 %v2545_v40, %v850_v59 }
  0xfa   : > { %2201 = vrcp.f32 %v1174_v63  ;;  %v2671_v10 = vmul.f32 1.442695, %v987_v4  ;;  %v882_v12 = vmul.f32 %v2540_v38, %v742_v41  ;;  %v855_v13 = vmul.f32 %v2060_v60, %v2540_v38  ;;  %v755_v60 = vpop.f32.mrf.mxu1 }
  0xfb   : > { %v2178_v16 = vpop.eup %2177  ;;  %2203 = vrcp.f32 %v1206_v6  ;;  %v2675_v17 = vmul.f32 1.442695, %v1019_v7  ;;  %v985_v18 = vsub.f32 0.0, %v2669_v8  ;;  %v887_v19 = vmul.f32 %v2092_v5, %v2540_v38 }
  0xfc   : > { %v2180_v20 = vpop.eup %2179  ;;  %v1172_v23 = vadd.f32 1.0, %v2178_v16  ;;  %2205 = vpow2.f32 %v2633_v9  ;;  %v2681_v27 = vadd.f32 %v2545_v40, %v882_v12  ;;  %v2684_v28 = vadd.f32 %v2545_v40, %v855_v13  ;;  %v2061_v12 = vpop.f32.mrf.mxu0 }
  0xfd   : > { %v2182_v31 = vpop.eup %2181  ;;  %v1204_v32 = vadd.f32 1.0, %v2180_v20  ;;  %2207 = vpow2.f32 %v1114_v25  ;;  %v2686_v33 = vmul.f32 1.442695, %v985_v18  ;;  %v2689_v37 = vadd.f32 %v2545_v40, %v887_v19 }
  0xfe   : > { %v2184_v39 = vpop.eup %2183  ;;  %2209 = vrcp.f32 %v1172_v23  ;;  %v1175_v41 = vadd.f32 1.0, %v2182_v31  ;;  %v1017_v9 = vsub.f32 0.0, %v2681_v27  ;;  %v990_v42 = vsub.f32 0.0, %v2684_v28 }
  0xff   : > { %v2186_v43 = vpop.eup %2185  ;;  %v1362_v48 = vmul.f32 %v2184_v39, %v2550_v46  ;;  %2211 = vrcp.f32 %v1204_v32  ;;  %v1022_v51 = vsub.f32 0.0, %v2689_v37  ;;  %v853_v25 = vmul.f32 %v2540_v38, %v627_v29  ;;  %v2093_v39 = vpop.f32.mrf.mxu1 }
 0x100   : > { %v2188_v52 = vpop.eup %2187  ;;  %v1394_v56 = vmul.f32 %v2186_v43, %v2553_v47  ;;  %2213 = vrcp.f32 %v1175_v41  ;;  %v1122_v57 = vmul.f32 1.442695, %v1017_v9  ;;  %v1068_v59 = vmul.f32 1.442695, %v990_v42 }
 0x101   : > { %v2190_v46 = vpop.eup %2189  ;;  %v1946_v61 = vpack.c.bf16 %v1362_v48, %v1362_v48  ;;  %v1360_v63 = vmul.f32 %v2188_v52, %v2560_v54  ;;  %2215 = vpow2.f32 %v2643_v26  ;;  %v1132_v4 = vmul.f32 1.442695, %v1022_v51  ;;  %v630_v52 = vpop.f32.mrf.mxu0 }
 0x102   : > { %v2192_v5 = vpop.eup %2191  ;;  %v1978_v6 = vpack.c.bf16 %v1394_v56, %v1394_v56  ;;  %v1392_v7 = vmul.f32 %v2190_v46, %v2563_v55  ;;  %2217 = vpow2.f32 %v2652_v44  ;;  %v2709_v47 = vadd.f32 %v2545_v40, %v853_v25  ;;  %v758_v46 = vpop.f32.mrf.mxu1 }
 0x103   : > { %v2194_v13 = vpop.eup %2193  ;;  %1683 = vst.msk [vmem:[%s2701_s6 + $0x8] sm:$0xf] %vm1680_vm3, %v1946_v61  ;;  %v1944_v16 = vpack.c.bf16 %v1360_v63, %v1360_v63  ;;  %v1207_v54 = vadd.f32 1.0, %v2192_v5  ;;  %2219 = vpow2.f32 %v2654_v45  ;;  %v885_v26 = vmul.f32 %v2540_v38, %v755_v60 }
 0x104   : > { %v2196_v18 = vpop.eup %2195  ;;  %1715 = vst.msk [vmem:[%s2701_s6 + $0x88] sm:$0xf] %vm1680_vm3, %v1978_v6  ;;  %v1976_v55 = vpack.c.bf16 %v1392_v7, %v1392_v7  ;;  %v1363_v44 = vmul.f32 %v2194_v13, %v2570_v0  ;;  %2221 = vpow2.f32 %v2664_v2  ;;  %v988_v19 = vsub.f32 0.0, %v2709_v47 }
 0x105   : > { %v2198_v20 = vpop.eup %2197  ;;  %1681 = vst.msk [vmem:[%s2701_s6] sm:$0xf] %vm1680_vm3, %v1944_v16  ;;  %v1395_v23 = vmul.f32 %v2196_v18, %v2573_v1  ;;  %2223 = vrcp.f32 %v1207_v54  ;;  %v2724_v45 = vadd.f32 %v2545_v40, %v885_v26  ;;  %v856_v29 = vmul.f32 %v2061_v12, %v2540_v38  ;;  %v2064_v54 = vpop.f32.mrf.mxu0 }
 0x106   : > { %v2200_v31 = vpop.eup %2199  ;;  %1713 = vst.msk [vmem:[%s2701_s6 + $0x80] sm:$0xf] %vm1680_vm3, %v1976_v55  ;;  %v1947_v0 = vpack.c.bf16 %v1363_v44, %v1363_v44  ;;  %v1361_v2 = vmul.f32 %v2198_v20, %v2581_v11  ;;  %2225 = vpow2.f32 %v2671_v10  ;;  %v1064_v32 = vmul.f32 1.442695, %v988_v19 }
 0x107   : > { %v2202_v41 = vpop.eup %2201  ;;  %v1979_v1 = vpack.c.bf16 %v1395_v23, %v1395_v23  ;;  %v1393_v9 = vmul.f32 %v2200_v31, %v2584_v14  ;;  %2227 = vpow2.f32 %v2675_v17  ;;  %v1020_v42 = vsub.f32 0.0, %v2724_v45 }
 0x108   : > { %v2204_v43 = vpop.eup %2203  ;;  %1684 = vst.msk [vmem:[%s2701_s6 + $0xc] sm:$0xf] %vm1680_vm3, %v1947_v0  ;;  %v1945_v48 = vpack.c.bf16 %v1361_v2, %v1361_v2  ;;  %v1366_v11 = vmul.f32 %v2202_v41, %v2587_v15  ;;  %2229 = vpow2.f32 %v2686_v33  ;;  %v2739_v10 = vadd.f32 %v2545_v40, %v856_v29  ;;  %v2096_v0 = vpop.f32.mrf.mxu1 }
 0x109   : > { %v2206_v51 = vpop.eup %2205  ;;  %1716 = vst.msk [vmem:[%s2701_s6 + $0x8c] sm:$0xf] %vm1680_vm3, %v1979_v1  ;;  %v1977_v14 = vpack.c.bf16 %v1393_v9, %v1393_v9  ;;  %v1398_v17 = vmul.f32 %v2204_v43, %v2594_v24  ;;  %2231 = vpow2.f32 %v1122_v57  ;;  %v1128_v25 = vmul.f32 1.442695, %v1020_v42  ;;  %v643_v1 = vpop.f32.mrf.mxu0 }
 0x10a   : > { %v2208_v56 = vpop.eup %2207  ;;  %1682 = vst.msk [vmem:[%s2701_s6 + $0x4] sm:$0xf] %vm1680_vm3, %v1945_v48  ;;  %v1950_v15 = vpack.c.bf16 %v1366_v11, %v1366_v11  ;;  %v1173_v60 = vadd.f32 1.0, %v2206_v51  ;;  %2233 = vpow2.f32 %v1068_v59  ;;  %v991_v33 = vsub.f32 0.0, %v2739_v10 }
 0x10b   : > { %v2210_v61 = vpop.eup %2209  ;;  %1714 = vst.msk [vmem:[%s2701_s6 + $0x84] sm:$0xf] %vm1680_vm3, %v1977_v14  ;;  %v1982_v63 = vpack.c.bf16 %v1398_v17, %v1398_v17  ;;  %v1205_v5 = vadd.f32 1.0, %v2208_v56  ;;  %2235 = vpow2.f32 %v1132_v4  ;;  %v888_v24 = vmul.f32 %v2093_v39, %v2540_v38 }
 0x10c   : > { %v2212_v57 = vpop.eup %2211  ;;  %1687 = vst.msk [vmem:[%s2701_s6 + $0x18] sm:$0xf] %vm1680_vm3, %v1950_v15  ;;  %v1364_v6 = vmul.f32 %v2210_v61, %v2601_v34  ;;  %2237 = vrcp.f32 %v1173_v60  ;;  %v1070_v7 = vmul.f32 1.442695, %v991_v33  ;;  %v854_v59 = vmul.f32 %v2540_v38, %v630_v52  ;;  %v771_v60 = vpop.f32.mrf.mxu1 }
 0x10d   : > { %v2214_v12 = vpop.eup %2213  ;;  %1719 = vst.msk [vmem:[%s2701_s6 + $0x98] sm:$0xf] %vm1680_vm3, %v1982_v63  ;;  %v1396_v13 = vmul.f32 %v2212_v57, %v2604_v35  ;;  %2239 = vrcp.f32 %v1205_v5  ;;  %v2758_v4 = vadd.f32 %v2545_v40, %v888_v24  ;;  %v886_v16 = vmul.f32 %v2540_v38, %v758_v46 }
 0x10e   : > { %v2216_v26 = vpop.eup %2215  ;;  %v1948_v18 = vpack.c.bf16 %v1364_v6, %v1364_v6  ;;  %v1367_v34 = vmul.f32 %v2214_v12, %v2607_v36  ;;  %2241 = vpow2.f32 %v1064_v32  ;;  %v2763_v55 = vadd.f32 %v2545_v40, %v854_v59 }
 0x10f   : > { %v2218_v44 = vpop.eup %2217  ;;  %v1980_v19 = vpack.c.bf16 %v1396_v13, %v1396_v13  ;;  %v1178_v35 = vadd.f32 1.0, %v2216_v26  ;;  %2243 = vpow2.f32 %v1128_v25  ;;  %v1023_v20 = vsub.f32 0.0, %v2758_v4  ;;  %v2065_v13 = vpop.f32.mrf.mxu0 }
 0x110   : > { %v2220_v23 = vpop.eup %2219  ;;  %1685 = vst.msk [vmem:[%s2701_s6 + $0x10] sm:$0xf] %vm1680_vm3, %v1948_v18  ;;  %v1951_v29 = vpack.c.bf16 %v1367_v34, %v1367_v34  ;;  %v1210_v31 = vadd.f32 1.0, %v2218_v44  ;;  %2245 = vpow2.f32 %v1070_v7  ;;  %v989_v36 = vsub.f32 0.0, %v2763_v55  ;;  %v2097_v34 = vpop.f32.mrf.mxu1 }
 0x111   : > { %v2222_v2 = vpop.eup %2221  ;;  %1717 = vst.msk [vmem:[%s2701_s6 + $0x90] sm:$0xf] %vm1680_vm3, %v1980_v19  ;;  %2247 = vrcp.f32 %v1178_v35  ;;  %v1176_v32 = vadd.f32 1.0, %v2220_v23  ;;  %v1134_v39 = vmul.f32 1.442695, %v1023_v20  ;;  %v2772_v41 = vadd.f32 %v2545_v40, %v886_v16 }
 0x112   : > { %v2224_v9 = vpop.eup %2223  ;;  %1688 = vst.msk [vmem:[%s2701_s6 + $0x1c] sm:$0xf] %vm1680_vm3, %v1951_v29  ;;  %2249 = vrcp.f32 %v1210_v31  ;;  %v1208_v42 = vadd.f32 1.0, %v2222_v2  ;;  %v1066_v43 = vmul.f32 1.442695, %v989_v36  ;;  %v859_v48 = vmul.f32 %v2064_v54, %v2540_v38 }
 0x113   : > { %v2226_v11 = vpop.eup %2225  ;;  %v1399_v51 = vmul.f32 %v2224_v9, %v2615_v49  ;;  %2251 = vrcp.f32 %v1176_v32  ;;  %v1021_v14 = vsub.f32 0.0, %v2772_v41  ;;  %v891_v17 = vmul.f32 %v2096_v0, %v2540_v38 }
 0x114   : > { %v2228_v25 = vpop.eup %2227  ;;  %2253 = vrcp.f32 %v1208_v42  ;;  %v1179_v52 = vadd.f32 1.0, %v2226_v11  ;;  %v2781_v56 = vadd.f32 %v2545_v40, %v859_v48  ;;  %v857_v15 = vmul.f32 %v2540_v38, %v643_v1  ;;  %v774_v11 = vpop.f32.mrf.mxu1 }
 0x115   : > { %v2230_v33 = vpop.eup %2229  ;;  %v1983_v46 = vpack.c.bf16 %v1399_v51, %v1399_v51  ;;  %v1211_v61 = vadd.f32 1.0, %v2228_v25  ;;  %2255 = vpow2.f32 %v1134_v39  ;;  %v1130_v49 = vmul.f32 1.442695, %v1021_v14 }
 0x116   : > { %v2232_v63 = vpop.eup %2231  ;;  %2257 = vrcp.f32 %v1179_v52  ;;  %v1177_v5 = vadd.f32 1.0, %v2230_v33  ;;  %v994_v24 = vsub.f32 0.0, %v2781_v56  ;;  %v2786_v57 = vadd.f32 %v2545_v40, %v891_v17 }
 0x117   : > { %v2234_v6 = vpop.eup %2233  ;;  %1720 = vst.msk [vmem:[%s2701_s6 + $0x9c] sm:$0xf] %vm1680_vm3, %v1983_v46  ;;  %2259 = vrcp.f32 %v1211_v61  ;;  %v1209_v7 = vadd.f32 1.0, %v2232_v63  ;;  %v2791_v59 = vadd.f32 %v2545_v40, %v857_v15  ;;  %v889_v12 = vmul.f32 %v2540_v38, %v771_v60 }
 0x118   : > { %v2236_v16 = vpop.eup %2235  ;;  %2261 = vrcp.f32 %v1177_v5  ;;  %v1182_v54 = vadd.f32 1.0, %v2234_v6  ;;  %v1076_v26 = vmul.f32 1.442695, %v994_v24  ;;  %v1026_v18 = vsub.f32 0.0, %v2786_v57 }
 0x119   : > { %v2238_v44 = vpop.eup %2237  ;;  %2263 = vrcp.f32 %v1209_v7  ;;  %v1214_v19 = vadd.f32 1.0, %v2236_v16  ;;  %v992_v35 = vsub.f32 0.0, %v2791_v59  ;;  %v2797_v20 = vadd.f32 %v2545_v40, %v889_v12 }
 0x11a   : > { %v2240_v23 = vpop.eup %2239  ;;  %v1365_v29 = vmul.f32 %v2238_v44, %v2618_v50  ;;  %2265 = vrcp.f32 %v1182_v54  ;;  %v1140_v31 = vmul.f32 1.442695, %v1026_v18  ;;  %v860_v36 = vmul.f32 %v2065_v13, %v2540_v38  ;;  %v646_v50 = vpop.f32.mrf.mxu0 }
 0x11b   : > { %v2242_v0 = vpop.eup %2241  ;;  %v1397_v2 = vmul.f32 %v2240_v23, %v2625_v62  ;;  %2267 = vrcp.f32 %v1214_v19  ;;  %v1072_v32 = vmul.f32 1.442695, %v992_v35  ;;  %v1024_v39 = vsub.f32 0.0, %v2797_v20 }
 0x11c   : > { %v2244_v1 = vpop.eup %2243  ;;  %v1949_v9 = vpack.c.bf16 %v1365_v29, %v1365_v29  ;;  %v1180_v42 = vadd.f32 1.0, %v2242_v0  ;;  %2269 = vpow2.f32 %v1066_v43  ;;  %v2804_v48 = vadd.f32 %v2545_v40, %v860_v36  ;;  %v2068_v13 = vpop.f32.mrf.mxu0 }
 0x11d   : > { %v2246_v51 = vpop.eup %2245  ;;  %v1981_v14 = vpack.c.bf16 %v1397_v2, %v1397_v2  ;;  %v1212_v17 = vadd.f32 1.0, %v2244_v1  ;;  %2271 = vpow2.f32 %v1130_v49  ;;  %v1136_v62 = vmul.f32 1.442695, %v1024_v39  ;;  %v2100_v29 = vpop.f32.mrf.mxu1 }
 0x11e   : > { %v2248_v25 = vpop.eup %2247  ;;  %1686 = vst.msk [vmem:[%s2701_s6 + $0x14] sm:$0xf] %vm1680_vm3, %v1949_v9  ;;  %2273 = vrcp.f32 %v1180_v42  ;;  %v1183_v52 = vadd.f32 1.0, %v2246_v51  ;;  %v995_v15 = vsub.f32 0.0, %v2804_v48  ;;  %v892_v43 = vmul.f32 %v2097_v34, %v2540_v38 }
 0x11f   : > { %v2250_v60 = vpop.eup %2249  ;;  %1718 = vst.msk [vmem:[%s2701_s6 + $0x94] sm:$0xf] %vm1680_vm3, %v1981_v14  ;;  %v1370_v33 = vmul.f32 %v2248_v25, %v2629_v3  ;;  %2275 = vrcp.f32 %v1212_v17  ;;  %v858_v46 = vmul.f32 %v2540_v38, %v646_v50  ;;  %v890_v61 = vmul.f32 %v2540_v38, %v774_v11 }
 0x120   : > { %v2252_v49 = vpop.eup %2251  ;;  %v1402_v63 = vmul.f32 %v2250_v60, %v2638_v21  ;;  %2277 = vrcp.f32 %v1183_v52  ;;  %v1078_v5 = vmul.f32 1.442695, %v995_v15  ;;  %v2817_v24 = vadd.f32 %v2545_v40, %v892_v43 }
 0x121   : > { %v2254_v6 = vpop.eup %2253  ;;  %v1954_v7 = vpack.c.bf16 %v1370_v33, %v1370_v33  ;;  %v1368_v12 = vmul.f32 %v2252_v49, %v2641_v22  ;;  %2279 = vpow2.f32 %v1076_v26  ;;  %v2821_v3 = vadd.f32 %v2545_v40, %v858_v46 }
 0x122   : > { %v2256_v16 = vpop.eup %2255  ;;  %v1986_v54 = vpack.c.bf16 %v1402_v63, %v1402_v63  ;;  %v1400_v21 = vmul.f32 %v2254_v6, %v2648_v30  ;;  %2281 = vpow2.f32 %v1140_v31  ;;  %v1027_v18 = vsub.f32 0.0, %v2817_v24 }
 0x123   : > { %v2258_v34 = vpop.eup %2257  ;;  %1691 = vst.msk [vmem:[%s2701_s6 + $0x28] sm:$0xf] %vm1680_vm3, %v1954_v7  ;;  %v1952_v44 = vpack.c.bf16 %v1368_v12, %v1368_v12  ;;  %v1215_v19 = vadd.f32 1.0, %v2256_v16  ;;  %2283 = vpow2.f32 %v1072_v32  ;;  %v993_v22 = vsub.f32 0.0, %v2821_v3  ;;  %v659_v32 = vpop.f32.mrf.mxu0 }
 0x124   : > { %v2260_v26 = vpop.eup %2259  ;;  %1723 = vst.msk [vmem:[%s2701_s6 + $0xa8] sm:$0xf] %vm1680_vm3, %v1986_v54  ;;  %v1984_v35 = vpack.c.bf16 %v1400_v21, %v1400_v21  ;;  %v1371_v23 = vmul.f32 %v2258_v34, %v2658_v53  ;;  %2285 = vpow2.f32 %v1136_v62  ;;  %v1142_v30 = vmul.f32 1.442695, %v1027_v18  ;;  %v787_v62 = vpop.f32.mrf.mxu1 }
 0x125   : > { %v2262_v31 = vpop.eup %2261  ;;  %1689 = vst.msk [vmem:[%s2701_s6 + $0x20] sm:$0xf] %vm1680_vm3, %v1952_v44  ;;  %v1403_v36 = vmul.f32 %v2260_v26, %v2661_v58  ;;  %2287 = vrcp.f32 %v1215_v19  ;;  %v1074_v0 = vmul.f32 1.442695, %v993_v22  ;;  %v2835_v2 = vadd.f32 %v2545_v40, %v890_v61  ;;  %v2069_v60 = vpop.f32.mrf.mxu0 }
 0x126   : > { %v2264_v39 = vpop.eup %2263  ;;  %1721 = vst.msk [vmem:[%s2701_s6 + $0xa0] sm:$0xf] %vm1680_vm3, %v1984_v35  ;;  %v1955_v1 = vpack.c.bf16 %v1371_v23, %v1371_v23  ;;  %v1369_v53 = vmul.f32 %v2262_v31, %v2669_v8  ;;  %2289 = vpow2.f32 %v1078_v5  ;;  %v863_v9 = vmul.f32 %v2068_v13, %v2540_v38  ;;  %v2101_v54 = vpop.f32.mrf.mxu1 }
 0x127   : > { %v2266_v42 = vpop.eup %2265  ;;  %v1987_v50 = vpack.c.bf16 %v1403_v36, %v1403_v36  ;;  %v1401_v58 = vmul.f32 %v2264_v39, %v2681_v27  ;;  %2291 = vpow2.f32 %v1142_v30  ;;  %v1025_v11 = vsub.f32 0.0, %v2835_v2  ;;  %v662_v19 = vpop.f32.mrf.mxu0 }
 0x128   : > { %v2268_v51 = vpop.eup %2267  ;;  %1692 = vst.msk [vmem:[%s2701_s6 + $0x2c] sm:$0xf] %vm1680_vm3, %v1955_v1  ;;  %v1953_v14 = vpack.c.bf16 %v1369_v53, %v1369_v53  ;;  %v1374_v17 = vmul.f32 %v2266_v42, %v2684_v28  ;;  %2293 = vpow2.f32 %v1074_v0  ;;  %v2847_v8 = vadd.f32 %v2545_v40, %v863_v9  ;;  %v790_v1 = vpop.f32.mrf.mxu1 }
 0x129   : > { %v2270_v25 = vpop.eup %2269  ;;  %1724 = vst.msk [vmem:[%s2701_s6 + $0xac] sm:$0xf] %vm1680_vm3, %v1987_v50  ;;  %v1985_v27 = vpack.c.bf16 %v1401_v58, %v1401_v58  ;;  %v1406_v52 = vmul.f32 %v2268_v51, %v2689_v37  ;;  %v1138_v15 = vmul.f32 1.442695, %v1025_v11  ;;  %v895_v43 = vmul.f32 %v2100_v29, %v2540_v38  ;;  %v2072_v58 = vpop.f32.mrf.mxu0 }
 0x12a   : > { %v2272_v33 = vpop.eup %2271  ;;  %1690 = vst.msk [vmem:[%s2701_s6 + $0x24] sm:$0xf] %vm1680_vm3, %v1953_v14  ;;  %v1958_v28 = vpack.c.bf16 %v1374_v17, %v1374_v17  ;;  %v1181_v46 = vadd.f32 1.0, %v2270_v25  ;;  %v998_v61 = vsub.f32 0.0, %v2847_v8  ;;  %v861_v49 = vmul.f32 %v2540_v38, %v659_v32 }
 0x12b   : > { %v2274_v63 = vpop.eup %2273  ;;  %1722 = vst.msk [vmem:[%s2701_s6 + $0xa4] sm:$0xf] %vm1680_vm3, %v1985_v27  ;;  %v1990_v5 = vpack.c.bf16 %v1406_v52, %v1406_v52  ;;  %v1213_v37 = vadd.f32 1.0, %v2272_v33  ;;  %2295 = vpow2.f32 %v1138_v15  ;;  %v2860_v6 = vadd.f32 %v2545_v40, %v895_v43 }
 0x12c   : > { %v2276_v7 = vpop.eup %2275  ;;  %1695 = vst.msk [vmem:[%s2701_s6 + $0x38] sm:$0xf] %vm1680_vm3, %v1958_v28  ;;  %v1372_v12 = vmul.f32 %v2274_v63, %v2709_v47  ;;  %2297 = vrcp.f32 %v1181_v46  ;;  %v1084_v13 = vmul.f32 1.442695, %v998_v61  ;;  %v2866_v16 = vadd.f32 %v2545_v40, %v861_v49  ;;  %v2104_v28 = vpop.f32.mrf.mxu1 }
 0x12d   : > { %v2278_v21 = vpop.eup %2277  ;;  %1727 = vst.msk [vmem:[%s2701_s6 + $0xb8] sm:$0xf] %vm1680_vm3, %v1990_v5  ;;  %v1404_v18 = vmul.f32 %v2276_v7, %v2724_v45  ;;  %2299 = vrcp.f32 %v1213_v37  ;;  %v1030_v34 = vsub.f32 0.0, %v2860_v6  ;;  %v893_v44 = vmul.f32 %v2540_v38, %v787_v62  ;;  %v675_v49 = vpop.f32.mrf.mxu0 }
 0x12e   : > { %v2280_v22 = vpop.eup %2279  ;;  %v1956_v47 = vpack.c.bf16 %v1372_v12, %v1372_v12  ;;  %v1375_v26 = vmul.f32 %v2278_v21, %v2739_v10  ;;  %2301 = vpow2.f32 %v1084_v13  ;;  %v996_v35 = vsub.f32 0.0, %v2866_v16 }
 0x12f   : > { %v2282_v23 = vpop.eup %2281  ;;  %v1988_v30 = vpack.c.bf16 %v1404_v18, %v1404_v18  ;;  %v1186_v29 = vadd.f32 1.0, %v2280_v22  ;;  %v1148_v31 = vmul.f32 1.442695, %v1030_v34  ;;  %v2876_v45 = vadd.f32 %v2545_v40, %v893_v44  ;;  %v803_v44 = vpop.f32.mrf.mxu1 }
 0x130   : > { %v2284_v36 = vpop.eup %2283  ;;  %1693 = vst.msk [vmem:[%s2701_s6 + $0x30] sm:$0xf] %vm1680_vm3, %v1956_v47  ;;  %v1959_v0 = vpack.c.bf16 %v1375_v26, %v1375_v26  ;;  %v1218_v32 = vadd.f32 1.0, %v2282_v23  ;;  %v1080_v39 = vmul.f32 1.442695, %v996_v35  ;;  %v864_v10 = vmul.f32 %v2069_v60, %v2540_v38 }
 0x131   : > { %v2286_v53 = vpop.eup %2285  ;;  %1725 = vst.msk [vmem:[%s2701_s6 + $0xb0] sm:$0xf] %vm1680_vm3, %v1988_v30  ;;  %2303 = vrcp.f32 %v1186_v29  ;;  %v1184_v9 = vadd.f32 1.0, %v2284_v36  ;;  %v1028_v42 = vsub.f32 0.0, %v2876_v45  ;;  %v896_v50 = vmul.f32 %v2101_v54, %v2540_v38  ;;  %v2915_v47 = vld [vmem:[%s3106_s3] ss:$0 sm:$0xff] }
 0x132   : > { %v2288_v11 = vpop.eup %2287  ;;  %1696 = vst.msk [vmem:[%s2701_s6 + $0x3c] sm:$0xf] %vm1680_vm3, %v1959_v0  ;;  %2305 = vrcp.f32 %v1218_v32  ;;  %v1216_v51 = vadd.f32 1.0, %v2286_v53  ;;  %v2888_v14 = vadd.f32 %v2545_v40, %v864_v10  ;;  %v862_v17 = vmul.f32 %v2540_v38, %v662_v19  ;;  %v2073_v53 = vpop.f32.mrf.mxu0 }
 0x133   : > { %v2290_v62 = vpop.eup %2289  ;;  %v1407_v25 = vmul.f32 %v2288_v11, %v2758_v4  ;;  %2307 = vrcp.f32 %v1184_v9  ;;  %v1144_v27 = vmul.f32 1.442695, %v1028_v42  ;;  %v2893_v52 = vadd.f32 %v2545_v40, %v896_v50  ;;  %v2105_v9 = vpop.f32.mrf.mxu1 }
 0x134   : > { %v2292_v15 = vpop.eup %2291  ;;  %2309 = vrcp.f32 %v1216_v51  ;;  %v1187_v43 = vadd.f32 1.0, %v2290_v62  ;;  %v999_v60 = vsub.f32 0.0, %v2888_v14  ;;  %v2897_v33 = vadd.f32 %v2545_v40, %v862_v17  ;;  %v2906_v40 = vld [vmem:[%s3105_s2] ss:$0 sm:$0xff] }
 0x135   : > { %v2294_v46 = vpop.eup %2293  ;;  %v1991_v38 = vpack.c.bf16 %v1407_v25, %v1407_v25  ;;  %v1219_v61 = vadd.f32 1.0, %v2292_v15  ;;  %2311 = vpow2.f32 %v1148_v31  ;;  %v1031_v4 = vsub.f32 0.0, %v2893_v52 }
 0x136   : > { %2313 = vrcp.f32 %v1187_v43  ;;  %v1185_v63 = vadd.f32 1.0, %v2294_v46  ;;  %v1086_v5 = vmul.f32 1.442695, %v999_v60  ;;  %v997_v37 = vsub.f32 0.0, %v2897_v33 }
 0x137   : > { %1728 = vst.msk [vmem:[%s2701_s6 + $0xbc] sm:$0xf] %vm1680_vm3, %v1991_v38  ;;  %2315 = vrcp.f32 %v1219_v61  ;;  %v1150_v7 = vmul.f32 1.442695, %v1031_v4  ;;  %v894_v12 = vmul.f32 %v2906_v40, %v790_v1  ;;  %v867_v13 = vmul.f32 %v2906_v40, %v2072_v58  ;;  %v678_v38 = vpop.f32.mrf.mxu0 }
 0x138   : > { %v2296_v54 = vpop.eup %2295  ;;  %2317 = vrcp.f32 %v1185_v63  ;;  %v1082_v21 = vmul.f32 1.442695, %v997_v37  ;;  %v899_v18 = vmul.f32 %v2906_v40, %v2104_v28  ;;  %v865_v34 = vmul.f32 %v2906_v40, %v675_v49 }
 0x139   : > { %v2298_v19 = vpop.eup %2297  ;;  %v1217_v22 = vadd.f32 1.0, %v2296_v54  ;;  %2319 = vpow2.f32 %v1080_v39  ;;  %v2918_v26 = vadd.f32 %v2915_v47, %v894_v12  ;;  %v2921_v35 = vadd.f32 %v2915_v47, %v867_v13  ;;  %v806_v54 = vpop.f32.mrf.mxu1 }
 0x13a   : > { %v2300_v23 = vpop.eup %2299  ;;  %v1373_v30 = vmul.f32 %v2298_v19, %v2763_v55  ;;  %2321 = vpow2.f32 %v1144_v27  ;;  %v2925_v29 = vadd.f32 %v2915_v47, %v899_v18  ;;  %v2928_v31 = vadd.f32 %v2915_v47, %v865_v34  ;;  %v2076_v19 = vpop.f32.mrf.mxu0 }
 0x13b   : > { %v2302_v36 = vpop.eup %2301  ;;  %v1405_v0 = vmul.f32 %v2300_v23, %v2772_v41  ;;  %2323 = vrcp.f32 %v1217_v22  ;;  %v1029_v32 = vsub.f32 0.0, %v2918_v26  ;;  %v1002_v39 = vsub.f32 0.0, %v2921_v35 }
 0x13c   : > { %v1957_v10 = vpack.c.bf16 %v1373_v30, %v1373_v30  ;;  %v1190_v1 = vadd.f32 1.0, %v2302_v36  ;;  %2325 = vpow2.f32 %v1086_v5  ;;  %v1034_v55 = vsub.f32 0.0, %v2925_v29 }
 0x13d   : > { %v1989_v42 = vpack.c.bf16 %v1405_v0, %v1405_v0  ;;  %2327 = vpow2.f32 %v1150_v7  ;;  %v1146_v50 = vmul.f32 1.442695, %v1029_v32  ;;  %v1092_v58 = vmul.f32 1.442695, %v1002_v39 }
 0x13e   : > { %v2304_v11 = vpop.eup %2303  ;;  %1694 = vst.msk [vmem:[%s2701_s6 + $0x34] sm:$0xf] %vm1680_vm3, %v1957_v10  ;;  %2329 = vrcp.f32 %v1190_v1  ;;  %v1156_v41 = vmul.f32 1.442695, %v1034_v55  ;;  %v1000_v51 = vsub.f32 0.0, %v2928_v31  ;;  %v897_v17 = vmul.f32 %v2906_v40, %v803_v44 }
 0x13f   : > { %v2306_v62 = vpop.eup %2305  ;;  %1726 = vst.msk [vmem:[%s2701_s6 + $0xb4] sm:$0xf] %vm1680_vm3, %v1989_v42  ;;  %v1378_v25 = vmul.f32 %v2304_v11, %v2781_v56  ;;  %2331 = vpow2.f32 %v1082_v21  ;;  %v868_v27 = vmul.f32 %v2906_v40, %v2073_v53  ;;  %v900_v15 = vmul.f32 %v2906_v40, %v2105_v9  ;;  %v2108_v53 = vpop.f32.mrf.mxu1 }
 0x140   : > { %v2308_v43 = vpop.eup %2307  ;;  %v1410_v60 = vmul.f32 %v2306_v62, %v2786_v57  ;;  %2333 = vpow2.f32 %v1146_v50  ;;  %v1088_v28 = vmul.f32 1.442695, %v1000_v51  ;;  %v2945_v46 = vadd.f32 %v2915_v47, %v897_v17  ;;  %v691_v11 = vpop.f32.mrf.mxu0 }
 0x141   : > { %v2310_v61 = vpop.eup %2309  ;;  %v1962_v4 = vpack.c.bf16 %v1378_v25, %v1378_v25  ;;  %v1376_v49 = vmul.f32 %v2308_v43, %v2791_v59  ;;  %2335 = vpow2.f32 %v1092_v58  ;;  %v2949_v56 = vadd.f32 %v2915_v47, %v868_v27 }
 0x142   : > { %v2312_v63 = vpop.eup %2311  ;;  %v1994_v5 = vpack.c.bf16 %v1410_v60, %v1410_v60  ;;  %v1408_v57 = vmul.f32 %v2310_v61, %v2797_v20  ;;  %2337 = vpow2.f32 %v1156_v41  ;;  %v1032_v37 = vsub.f32 0.0, %v2945_v46 }
 0x143   : > { %v2314_v7 = vpop.eup %2313  ;;  %1699 = vst.msk [vmem:[%s2701_s6 + $0x48] sm:$0xf] %vm1680_vm3, %v1962_v4  ;;  %v1960_v12 = vpack.c.bf16 %v1376_v49, %v1376_v49  ;;  %v1222_v13 = vadd.f32 1.0, %v2312_v63  ;;  %2339 = vpow2.f32 %v1088_v28  ;;  %v1003_v59 = vsub.f32 0.0, %v2949_v56 }
 0x144   : > { %v2316_v21 = vpop.eup %2315  ;;  %1731 = vst.msk [vmem:[%s2701_s6 + $0xc8] sm:$0xf] %vm1680_vm3, %v1994_v5  ;;  %v1992_v18 = vpack.c.bf16 %v1408_v57, %v1408_v57  ;;  %v1379_v20 = vmul.f32 %v2314_v7, %v2804_v48  ;;  %v1152_v34 = vmul.f32 1.442695, %v1032_v37  ;;  %v2960_v44 = vadd.f32 %v2915_v47, %v900_v15  ;;  %v819_v5 = vpop.f32.mrf.mxu1 }
 0x145   : > { %v2318_v22 = vpop.eup %2317  ;;  %1697 = vst.msk [vmem:[%s2701_s6 + $0x40] sm:$0xf] %vm1680_vm3, %v1960_v12  ;;  %v1411_v23 = vmul.f32 %v2316_v21, %v2817_v24  ;;  %2341 = vrcp.f32 %v1222_v13  ;;  %v1094_v30 = vmul.f32 1.442695, %v1003_v59  ;;  %v866_v36 = vmul.f32 %v2906_v40, %v678_v38  ;;  %v2077_v57 = vpop.f32.mrf.mxu0 }
 0x146   : > { %v2320_v0 = vpop.eup %2319  ;;  %1729 = vst.msk [vmem:[%s2701_s6 + $0xc0] sm:$0xf] %vm1680_vm3, %v1992_v18  ;;  %v1963_v32 = vpack.c.bf16 %v1379_v20, %v1379_v20  ;;  %v1377_v48 = vmul.f32 %v2318_v22, %v2821_v3  ;;  %2343 = vpow2.f32 %v1152_v34  ;;  %v1035_v39 = vsub.f32 0.0, %v2960_v44 }
 0x147   : > { %v2322_v10 = vpop.eup %2321  ;;  %v1995_v1 = vpack.c.bf16 %v1411_v23, %v1411_v23  ;;  %v1188_v55 = vadd.f32 1.0, %v2320_v0  ;;  %2345 = vpow2.f32 %v1094_v30  ;;  %v2971_v24 = vadd.f32 %v2915_v47, %v866_v36  ;;  %v2109_v0 = vpop.f32.mrf.mxu1 }
 0x148   : > { %v2324_v9 = vpop.eup %2323  ;;  %1700 = vst.msk [vmem:[%s2701_s6 + $0x4c] sm:$0xf] %vm1680_vm3, %v1963_v32  ;;  %v1961_v42 = vpack.c.bf16 %v1377_v48, %v1377_v48  ;;  %v1220_v50 = vadd.f32 1.0, %v2322_v10  ;;  %v1158_v58 = vmul.f32 1.442695, %v1035_v39  ;;  %v898_v3 = vmul.f32 %v2906_v40, %v806_v54  ;;  %v694_v32 = vpop.f32.mrf.mxu0 }
 0x149   : > { %v2326_v41 = vpop.eup %2325  ;;  %1732 = vst.msk [vmem:[%s2701_s6 + $0xcc] sm:$0xf] %vm1680_vm3, %v1995_v1  ;;  %v1409_v51 = vmul.f32 %v2324_v9, %v2835_v2  ;;  %2347 = vrcp.f32 %v1188_v55  ;;  %v1001_v17 = vsub.f32 0.0, %v2971_v24  ;;  %v871_v62 = vmul.f32 %v2906_v40, %v2076_v19 }
 0x14a   : > { %v2328_v25 = vpop.eup %2327  ;;  %1698 = vst.msk [vmem:[%s2701_s6 + $0x44] sm:$0xf] %vm1680_vm3, %v1961_v42  ;;  %2349 = vrcp.f32 %v1220_v50  ;;  %v1191_v27 = vadd.f32 1.0, %v2326_v41  ;;  %v2984_v15 = vadd.f32 %v2915_v47, %v898_v3  ;;  %v903_v43 = vmul.f32 %v2906_v40, %v2108_v53 }
 0x14b   : > { %v2330_v60 = vpop.eup %2329  ;;  %v1993_v28 = vpack.c.bf16 %v1409_v51, %v1409_v51  ;;  %v1223_v38 = vadd.f32 1.0, %v2328_v25  ;;  %2351 = vpow2.f32 %v1158_v58  ;;  %v1090_v2 = vmul.f32 1.442695, %v1001_v17 }
 0x14c   : > { %v2332_v61 = vpop.eup %2331  ;;  %v1382_v4 = vmul.f32 %v2330_v60, %v2847_v8  ;;  %2353 = vrcp.f32 %v1191_v27  ;;  %v1033_v49 = vsub.f32 0.0, %v2984_v15  ;;  %v2990_v63 = vadd.f32 %v2915_v47, %v871_v62  ;;  %v822_v62 = vpop.f32.mrf.mxu1 }
 0x14d   : > { %v2334_v37 = vpop.eup %2333  ;;  %1730 = vst.msk [vmem:[%s2701_s6 + $0xc4] sm:$0xf] %vm1680_vm3, %v1993_v28  ;;  %2355 = vrcp.f32 %v1223_v38  ;;  %v1189_v7 = vadd.f32 1.0, %v2332_v61  ;;  %v2995_v12 = vadd.f32 %v2915_v47, %v903_v43  ;;  %v869_v13 = vmul.f32 %v2906_v40, %v691_v11 }
 0x14e   : > { %v2336_v8 = vpop.eup %2335  ;;  %v1966_v59 = vpack.c.bf16 %v1382_v4, %v1382_v4  ;;  %v1221_v54 = vadd.f32 1.0, %v2334_v37  ;;  %2357 = vpow2.f32 %v1090_v2  ;;  %v1154_v21 = vmul.f32 1.442695, %v1033_v49 }
 0x14f   : > { %v2338_v18 = vpop.eup %2337  ;;  %2359 = vrcp.f32 %v1189_v7  ;;  %v1194_v20 = vadd.f32 1.0, %v2336_v8  ;;  %v1006_v34 = vsub.f32 0.0, %v2990_v63  ;;  %v1038_v19 = vsub.f32 0.0, %v2995_v12 }
 0x150   : > { %v2340_v22 = vpop.eup %2339  ;;  %1703 = vst.msk [vmem:[%s2701_s6 + $0x58] sm:$0xf] %vm1680_vm3, %v1966_v59  ;;  %2361 = vrcp.f32 %v1221_v54  ;;  %v1226_v23 = vadd.f32 1.0, %v2338_v18  ;;  %v3003_v30 = vadd.f32 %v2915_v47, %v869_v13  ;;  %v901_v36 = vmul.f32 %v2906_v40, %v819_v5 }
 0x151   : > { %2363 = vrcp.f32 %v1194_v20  ;;  %v1192_v48 = vadd.f32 1.0, %v2340_v22  ;;  %v1100_v39 = vmul.f32 1.442695, %v1006_v34  ;;  %v1164_v10 = vmul.f32 1.442695, %v1038_v19 }
 0x152   : > { %v2342_v1 = vpop.eup %2341  ;;  %2365 = vrcp.f32 %v1226_v23  ;;  %v1004_v55 = vsub.f32 0.0, %v3003_v30  ;;  %v3008_v53 = vadd.f32 %v2915_v47, %v901_v36  ;;  %v872_v9 = vmul.f32 %v2906_v40, %v2077_v57 }
 0x153   : > { %v2344_v42 = vpop.eup %2343  ;;  %v1414_v50 = vmul.f32 %v2342_v1, %v2860_v6  ;;  %2367 = vrcp.f32 %v1192_v48  ;;  %v904_v58 = vmul.f32 %v2906_v40, %v2109_v0  ;;  %v870_v3 = vmul.f32 %v2906_v40, %v694_v32 }
 0x154   : > { %v2346_v11 = vpop.eup %2345  ;;  %v1224_v41 = vadd.f32 1.0, %v2344_v42  ;;  %2369 = vpow2.f32 %v1154_v21  ;;  %v1096_v51 = vmul.f32 1.442695, %v1004_v55  ;;  %v1036_v17 = vsub.f32 0.0, %v3008_v53 }
 0x155   : > { %v1998_v25 = vpack.c.bf16 %v1414_v50, %v1414_v50  ;;  %v1195_v27 = vadd.f32 1.0, %v2346_v11  ;;  %2371 = vpow2.f32 %v1100_v39  ;;  %v3016_v43 = vadd.f32 %v2915_v47, %v872_v9 }
 0x156   : > { %v2348_v6 = vpop.eup %2347  ;;  %2373 = vrcp.f32 %v1224_v41  ;;  %v1160_v60 = vmul.f32 1.442695, %v1036_v17  ;;  %v3019_v28 = vadd.f32 %v2915_v47, %v904_v58  ;;  %v3022_v38 = vadd.f32 %v2915_v47, %v870_v3 }
 0x157   : > { %v2350_v2 = vpop.eup %2349  ;;  %1735 = vst.msk [vmem:[%s2701_s6 + $0xd8] sm:$0xf] %vm1680_vm3, %v1998_v25  ;;  %v1380_v61 = vmul.f32 %v2348_v6, %v2866_v16  ;;  %2375 = vrcp.f32 %v1195_v27  ;;  %v1007_v4 = vsub.f32 0.0, %v3016_v43  ;;  %v902_v49 = vmul.f32 %v2906_v40, %v822_v62 }
 0x158   : > { %v2352_v5 = vpop.eup %2351  ;;  %v1412_v57 = vmul.f32 %v2350_v2, %v2876_v45  ;;  %2377 = vpow2.f32 %v1164_v10  ;;  %v1039_v37 = vsub.f32 0.0, %v3019_v28  ;;  %v1005_v7 = vsub.f32 0.0, %v3022_v38 }
 0x159   : > { %v2354_v13 = vpop.eup %2353  ;;  %v1964_v8 = vpack.c.bf16 %v1380_v61, %v1380_v61  ;;  %v1227_v59 = vadd.f32 1.0, %v2352_v5  ;;  %2379 = vpow2.f32 %v1096_v51  ;;  %v1102_v16 = vmul.f32 1.442695, %v1007_v4 }
 0x15a   : > { %v2356_v54 = vpop.eup %2355  ;;  %v1996_v21 = vpack.c.bf16 %v1412_v57, %v1412_v57  ;;  %v1383_v18 = vmul.f32 %v2354_v13, %v2888_v14  ;;  %2381 = vpow2.f32 %v1160_v60  ;;  %v1166_v40 = vmul.f32 1.442695, %v1039_v37 }
 0x15b   : > { %v2358_v20 = vpop.eup %2357  ;;  %1701 = vst.msk [vmem:[%s2701_s6 + $0x50] sm:$0xf] %vm1680_vm3, %v1964_v8  ;;  %v1415_v45 = vmul.f32 %v2356_v54, %v2893_v52  ;;  %2383 = vrcp.f32 %v1227_v59  ;;  %v1098_v34 = vmul.f32 1.442695, %v1005_v7  ;;  %v3037_v19 = vadd.f32 %v2915_v47, %v902_v49 }
 0x15c   : > { %v2360_v22 = vpop.eup %2359  ;;  %1733 = vst.msk [vmem:[%s2701_s6 + $0xd0] sm:$0xf] %vm1680_vm3, %v1996_v21  ;;  %v1967_v23 = vpack.c.bf16 %v1383_v18, %v1383_v18  ;;  %v1193_v36 = vadd.f32 1.0, %v2358_v20  ;;  %2385 = vpow2.f32 %v1102_v16 }
 0x15d   : > { %v2362_v14 = vpop.eup %2361  ;;  %v1999_v0 = vpack.c.bf16 %v1415_v45, %v1415_v45  ;;  %v1381_v32 = vmul.f32 %v2360_v22, %v2897_v33  ;;  %2387 = vpow2.f32 %v1166_v40  ;;  %v1037_v52 = vsub.f32 0.0, %v3037_v19 }
 0x15e   : > { %v2364_v48 = vpop.eup %2363  ;;  %1704 = vst.msk [vmem:[%s2701_s6 + $0x5c] sm:$0xf] %vm1680_vm3, %v1967_v23  ;;  %v1413_v47 = vmul.f32 %v2362_v14, %v2918_v26  ;;  %2389 = vrcp.f32 %v1193_v36 }
 0x15f   : > { %v2366_v39 = vpop.eup %2365  ;;  %1736 = vst.msk [vmem:[%s2701_s6 + $0xdc] sm:$0xf] %vm1680_vm3, %v1999_v0  ;;  %v1965_v10 = vpack.c.bf16 %v1381_v32, %v1381_v32  ;;  %v1386_v1 = vmul.f32 %v2364_v48, %v2921_v35  ;;  %2391 = vpow2.f32 %v1098_v34  ;;  %v1162_v33 = vmul.f32 1.442695, %v1037_v52 }
 0x160   : > { %v2368_v55 = vpop.eup %2367  ;;  %v1997_v9 = vpack.c.bf16 %v1413_v47, %v1413_v47  ;;  %v1418_v42 = vmul.f32 %v2366_v39, %v2925_v29 }
 0x161   : > { %v2370_v50 = vpop.eup %2369  ;;  %1702 = vst.msk [vmem:[%s2701_s6 + $0x54] sm:$0xf] %vm1680_vm3, %v1965_v10  ;;  %v1970_v26 = vpack.c.bf16 %v1386_v1, %v1386_v1  ;;  %v1384_v58 = vmul.f32 %v2368_v55, %v2928_v31  ;;  %2393 = vpow2.f32 %v1162_v33 }
 0x162   : > { %v2372_v3 = vpop.eup %2371  ;;  %1734 = vst.msk [vmem:[%s2701_s6 + $0xd4] sm:$0xf] %vm1680_vm3, %v1997_v9  ;;  %v2002_v35 = vpack.c.bf16 %v1418_v42, %v1418_v42  ;;  %v1225_v11 = vadd.f32 1.0, %v2370_v50 }
 0x163   : > { %v2374_v41 = vpop.eup %2373  ;;  %1707 = vst.msk [vmem:[%s2701_s6 + $0x68] sm:$0xf] %vm1680_vm3, %v1970_v26  ;;  %v1968_v51 = vpack.c.bf16 %v1384_v58, %v1384_v58  ;;  %v1198_v17 = vadd.f32 1.0, %v2372_v3 }
 0x164   : > { %v2376_v29 = vpop.eup %2375  ;;  %1739 = vst.msk [vmem:[%s2701_s6 + $0xe8] sm:$0xf] %vm1680_vm3, %v2002_v35  ;;  %v1416_v62 = vmul.f32 %v2374_v41, %v2945_v46  ;;  %2395 = vrcp.f32 %v1225_v11 }
 0x165   : > { %v2378_v31 = vpop.eup %2377  ;;  %1705 = vst.msk [vmem:[%s2701_s6 + $0x60] sm:$0xf] %vm1680_vm3, %v1968_v51  ;;  %v1387_v25 = vmul.f32 %v2376_v29, %v2949_v56  ;;  %2397 = vrcp.f32 %v1198_v17 }
 0x166   : > { %v2380_v27 = vpop.eup %2379  ;;  %v2000_v6 = vpack.c.bf16 %v1416_v62, %v1416_v62  ;;  %v1230_v60 = vadd.f32 1.0, %v2378_v31 }
 0x167   : > { %v2382_v2 = vpop.eup %2381  ;;  %v1971_v61 = vpack.c.bf16 %v1387_v25, %v1387_v25  ;;  %v1196_v4 = vadd.f32 1.0, %v2380_v27 }
 0x168   : > { %v2384_v49 = vpop.eup %2383  ;;  %1737 = vst.msk [vmem:[%s2701_s6 + $0xe0] sm:$0xf] %vm1680_vm3, %v2000_v6  ;;  %2399 = vrcp.f32 %v1230_v60  ;;  %v1228_v46 = vadd.f32 1.0, %v2382_v2 }
 0x169   : > { %v2386_v5 = vpop.eup %2385  ;;  %1708 = vst.msk [vmem:[%s2701_s6 + $0x6c] sm:$0xf] %vm1680_vm3, %v1971_v61  ;;  %v1419_v57 = vmul.f32 %v2384_v49, %v2960_v44  ;;  %2401 = vrcp.f32 %v1196_v4 }
 0x16a   : > { %v2388_v56 = vpop.eup %2387  ;;  %2403 = vrcp.f32 %v1228_v46  ;;  %v1199_v37 = vadd.f32 1.0, %v2386_v5 }
 0x16b   : > { %v2390_v7 = vpop.eup %2389  ;;  %v2003_v13 = vpack.c.bf16 %v1419_v57, %v1419_v57  ;;  %v1231_v8 = vadd.f32 1.0, %v2388_v56 }
 0x16c   : > { %v2392_v59 = vpop.eup %2391  ;;  %v1385_v16 = vmul.f32 %v2390_v7, %v2971_v24  ;;  %2405 = vrcp.f32 %v1199_v37 }
 0x16d   : > { %1740 = vst.msk [vmem:[%s2701_s6 + $0xec] sm:$0xf] %vm1680_vm3, %v2003_v13  ;;  %2407 = vrcp.f32 %v1231_v8  ;;  %v1197_v54 = vadd.f32 1.0, %v2392_v59 }
 0x16e   : > { %v2394_v21 = vpop.eup %2393  ;;  %v1969_v18 = vpack.c.bf16 %v1385_v16, %v1385_v16 }
 0x16f   : > { %2409 = vrcp.f32 %v1197_v54  ;;  %v1229_v44 = vadd.f32 1.0, %v2394_v21 }
 0x170   : > { %1706 = vst.msk [vmem:[%s2701_s6 + $0x64] sm:$0xf] %vm1680_vm3, %v1969_v18 }
 0x171   : > { %v2396_v40 = vpop.eup %2395  ;;  %2411 = vrcp.f32 %v1229_v44 }
 0x172   : > { %v2398_v20 = vpop.eup %2397  ;;  %v1417_v45 = vmul.f32 %v2396_v40, %v2984_v15 }
 0x173   : > { %v1390_v24 = vmul.f32 %v2398_v20, %v2990_v63 }
 0x174   : > { %v2001_v34 = vpack.c.bf16 %v1417_v45, %v1417_v45 }
 0x175   : > { %v2400_v22 = vpop.eup %2399  ;;  %v1974_v23 = vpack.c.bf16 %v1390_v24, %v1390_v24 }
 0x176   : > { %v2402_v36 = vpop.eup %2401  ;;  %1738 = vst.msk [vmem:[%s2701_s6 + $0xe4] sm:$0xf] %vm1680_vm3, %v2001_v34  ;;  %v1422_v14 = vmul.f32 %v2400_v22, %v2995_v12 }
 0x177   : > { %v2404_v0 = vpop.eup %2403  ;;  %1711 = vst.msk [vmem:[%s2701_s6 + $0x78] sm:$0xf] %vm1680_vm3, %v1974_v23  ;;  %v1388_v32 = vmul.f32 %v2402_v36, %v3003_v30 }
 0x178   : > { %v2006_v52 = vpack.c.bf16 %v1422_v14, %v1422_v14  ;;  %v1420_v15 = vmul.f32 %v2404_v0, %v3008_v53 }
 0x179   : > { %v2406_v63 = vpop.eup %2405  ;;  %v1972_v48 = vpack.c.bf16 %v1388_v32, %v1388_v32 }
 0x17a   : > { %v2408_v47 = vpop.eup %2407  ;;  %1743 = vst.msk [vmem:[%s2701_s6 + $0xf8] sm:$0xf] %vm1680_vm3, %v2006_v52  ;;  %v2004_v39 = vpack.c.bf16 %v1420_v15, %v1420_v15  ;;  %v1391_v12 = vmul.f32 %v2406_v63, %v3016_v43 }
 0x17b   : > { %1709 = vst.msk [vmem:[%s2701_s6 + $0x70] sm:$0xf] %vm1680_vm3, %v1972_v48  ;;  %v1423_v10 = vmul.f32 %v2408_v47, %v3019_v28 }
 0x17c   : > { %v2410_v30 = vpop.eup %2409  ;;  %1741 = vst.msk [vmem:[%s2701_s6 + $0xf0] sm:$0xf] %vm1680_vm3, %v2004_v39  ;;  %v1975_v1 = vpack.c.bf16 %v1391_v12, %v1391_v12 }
 0x17d   : > { %v2007_v53 = vpack.c.bf16 %v1423_v10, %v1423_v10  ;;  %v1389_v33 = vmul.f32 %v2410_v30, %v3022_v38 }
 0x17e   : > { %v2412_v55 = vpop.eup %2411  ;;  %1712 = vst.msk [vmem:[%s2701_s6 + $0x7c] sm:$0xf] %vm1680_vm3, %v1975_v1 }
 0x17f   : > { %1744 = vst.msk [vmem:[%s2701_s6 + $0xfc] sm:$0xf] %vm1680_vm3, %v2007_v53  ;;  %v1973_v9 = vpack.c.bf16 %v1389_v33, %v1389_v33  ;;  %v1421_v42 = vmul.f32 %v2412_v55, %v3037_v19 }
 0x181   : > { %1710 = vst.msk [vmem:[%s2701_s6 + $0x74] sm:$0xf] %vm1680_vm3, %v1973_v9  ;;  %v2005_v43 = vpack.c.bf16 %v1421_v42, %v1421_v42 }
 0x183   : > { %1742 = vst.msk [vmem:[%s2701_s6 + $0xf4] sm:$0xf] %vm1680_vm3, %v2005_v43 }
 0x184 PF: > { %s14_s15 = sadd.s32 1, %s2421_s15  }
 0x185   : > { %p11_p4 = scmp.ge.s32.totalorder %s14_s15, 6  }
 0x187   :  { %13 = sbr.rel (!%p11_p4) target bundleno = 1 (0x1), region = 66 }

</bundles_post_ra>
